<compile_context>
chip_gen: v6e
topology: v6e:2x2x1
jax: 0.10.0
libtpu: 0.0.40
codegen_flags: <defaults>
</compile_context>

<pallas_src>
import functools

import jax
import jax.numpy as jnp
from jax.experimental import pallas as pl
from jax.experimental.pallas import tpu as pltpu

EPS = 1e-5                    # torch.nn.BatchNorm1d default eps
H1, H2, H3 = 64, 16, 1
F32 = 4                       # bytes per float32
LANE = 128                    # VMEM lane width (last-dim padding granule)


# ----------------------------------------------------------------------------
# Small helpers (used both in-kernel and in the wrapper)
# ----------------------------------------------------------------------------
def _ru(n, m):
    return ((n + m - 1) // m) * m


def _row_mask(tile_idx, tile_b, batch):
    """(1, tile_b) f32 mask of valid (non-padded) rows of this batch tile."""
    rows = jax.lax.broadcasted_iota(jnp.int32, (1, tile_b), 1) + tile_idx * tile_b
    return (rows < batch).astype(jnp.float32)


def _fold_bn(s, q, batch, gamma, beta):
    """Training-mode BatchNorm (batch mean, biased var) -> (scale, shift)."""
    inv_n = 1.0 / batch
    mu = s * inv_n
    var = jnp.maximum(q * inv_n - mu * mu, 0.0)   # clamp tiny negative residue
    scale = gamma * jax.lax.rsqrt(var + EPS)
    shift = beta - mu * scale
    return scale, shift


# ----------------------------------------------------------------------------
# Kernels
# ----------------------------------------------------------------------------
def _fused3_kernel(x_ref, w1_ref, b1_ref, g1_ref, be1_ref,
                   w2_ref, b2_ref, g2_ref, be2_ref, w3_ref, b3_ref,
                   o_ref,
                   h1_sc, h2_sc, s1, q1, s2, q2, sc1, sh1, sc2, sh2,
                   *, tile_b, batch):
    """Whole network in one call; h1/h2 stay resident in VMEM scratch."""
    phase = pl.program_id(0)
    t = pl.program_id(1)
    mask = _row_mask(t, tile_b, batch)

    @pl.when(jnp.logical_and(phase == 0, t == 0))
    def _():
        s1[...] = jnp.zeros_like(s1)
        q1[...] = jnp.zeros_like(q1)
        s2[...] = jnp.zeros_like(s2)
        q2[...] = jnp.zeros_like(q2)

    # phase 0: Linear(input_dim -> 64); keep h1 in VMEM, accumulate stats.
    @pl.when(phase == 0)
    def _():
        h1 = jnp.dot(x_ref[...], w1_ref[...],
                     preferred_element_type=jnp.float32) + b1_ref[...]
        h1_sc[t] = h1
        s1[...] += jnp.dot(mask, h1, preferred_element_type=jnp.float32)
        q1[...] += jnp.dot(mask, h1 * h1, preferred_element_type=jnp.float32)

    # phase boundary: fold BN1 once (full-batch statistics).
    @pl.when(jnp.logical_and(phase == 1, t == 0))
    def _():
        sc, sh = _fold_bn(s1[...], q1[...], batch, g1_ref[...], be1_ref[...])
        sc1[...] = sc
        sh1[...] = sh

    # phase 1: BN1 + ReLU, Linear(64 -> 16); keep h2 in VMEM, accumulate stats.
    @pl.when(phase == 1)
    def _():
        a1 = jnp.maximum(h1_sc[t] * sc1[...] + sh1[...], 0.0)
        h2 = jnp.dot(a1, w2_ref[...],
                     preferred_element_type=jnp.float32) + b2_ref[...]
        h2_sc[t] = h2
        s2[...] += jnp.dot(mask, h2, preferred_element_type=jnp.float32)
        q2[...] += jnp.dot(mask, h2 * h2, preferred_element_type=jnp.float32)

    # phase boundary: fold BN2 once.
    @pl.when(jnp.logical_and(phase == 2, t == 0))
    def _():
        sc, sh = _fold_bn(s2[...], q2[...], batch, g2_ref[...], be2_ref[...])
        sc2[...] = sc
        sh2[...] = sh

    # phase 2: BN2 + ReLU, Linear(16 -> 1); the only phase that writes HBM.
    @pl.when(phase == 2)
    def _():
        a2 = jnp.maximum(h2_sc[t] * sc2[...] + sh2[...], 0.0)
        out = jnp.dot(a2, w3_ref[...],
                      preferred_element_type=jnp.float32) + b3_ref[0, 0]
        o_ref[...] = out.astype(o_ref.dtype)


def _fused23_kernel(h1_ref, sc1_ref, sh1_ref, w2_ref, b2_ref, g2_ref, be2_ref,
                    w3_ref, b3_ref, o_ref,
                    h2_sc, s2, q2, sc2, sh2, *, tile_b, batch):
    """Layers 2+3 fused; h2 stays resident in VMEM scratch (2-phase grid)."""
    phase = pl.program_id(0)
    t = pl.program_id(1)
    mask = _row_mask(t, tile_b, batch)

    @pl.when(jnp.logical_and(phase == 0, t == 0))
    def _():
        s2[...] = jnp.zeros_like(s2)
        q2[...] = jnp.zeros_like(q2)

    @pl.when(phase == 0)
    def _():
        a1 = jnp.maximum(h1_ref[...] * sc1_ref[...] + sh1_ref[...], 0.0)
        h2 = jnp.dot(a1, w2_ref[...],
                     preferred_element_type=jnp.float32) + b2_ref[...]
        h2_sc[t] = h2
        s2[...] += jnp.dot(mask, h2, preferred_element_type=jnp.float32)
        q2[...] += jnp.dot(mask, h2 * h2, preferred_element_type=jnp.float32)

    @pl.when(jnp.logical_and(phase == 1, t == 0))
    def _():
        sc, sh = _fold_bn(s2[...], q2[...], batch, g2_ref[...], be2_ref[...])
        sc2[...] = sc
        sh2[...] = sh

    @pl.when(phase == 1)
    def _():
        a2 = jnp.maximum(h2_sc[t] * sc2[...] + sh2[...], 0.0)
        out = jnp.dot(a2, w3_ref[...],
                      preferred_element_type=jnp.float32) + b3_ref[0, 0]
        o_ref[...] = out.astype(o_ref.dtype)


def _pass1_kernel(x_ref, w1_ref, b1_ref, h1_ref, s1_ref, q1_ref, *, tile_b, batch):
    t = pl.program_id(0)

    @pl.when(t == 0)
    def _():
        s1_ref[...] = jnp.zeros_like(s1_ref)
        q1_ref[...] = jnp.zeros_like(q1_ref)

    h1 = jnp.dot(x_ref[...], w1_ref[...],
                 preferred_element_type=jnp.float32) + b1_ref[...]
    h1_ref[...] = h1
    mask = _row_mask(t, tile_b, batch)
    s1_ref[...] += jnp.dot(mask, h1, preferred_element_type=jnp.float32)
    q1_ref[...] += jnp.dot(mask, h1 * h1, preferred_element_type=jnp.float32)


def _pass2_kernel(h1_ref, sc1_ref, sh1_ref, w2_ref, b2_ref,
                  h2_ref, s2_ref, q2_ref, *, tile_b, batch):
    t = pl.program_id(0)

    @pl.when(t == 0)
    def _():
        s2_ref[...] = jnp.zeros_like(s2_ref)
        q2_ref[...] = jnp.zeros_like(q2_ref)

    a1 = jnp.maximum(h1_ref[...] * sc1_ref[...] + sh1_ref[...], 0.0)
    h2 = jnp.dot(a1, w2_ref[...],
                 preferred_element_type=jnp.float32) + b2_ref[...]
    h2_ref[...] = h2
    mask = _row_mask(t, tile_b, batch)
    s2_ref[...] += jnp.dot(mask, h2, preferred_element_type=jnp.float32)
    q2_ref[...] += jnp.dot(mask, h2 * h2, preferred_element_type=jnp.float32)


def _pass3_kernel(h2_ref, sc2_ref, sh2_ref, w3_ref, b3_ref, o_ref):
    a2 = jnp.maximum(h2_ref[...] * sc2_ref[...] + sh2_ref[...], 0.0)
    out = jnp.dot(a2, w3_ref[...],
                  preferred_element_type=jnp.float32) + b3_ref[0, 0]
    o_ref[...] = out.astype(o_ref.dtype)


# ----------------------------------------------------------------------------
# Planning (generation-aware VMEM budget)
# ----------------------------------------------------------------------------
def _vmem_budget_bytes():
    """~75% of per-core VMEM: ~48 MiB on v7x (64 MiB/TC), ~96 MiB on v5e/v6e."""
    try:
        cap = int(pltpu.get_tpu_info().vmem_capacity_bytes)
    except Exception:
        cap = 64 << 20   # conservative fallback (v7x per-core VMEM)
    return (cap * 3) // 4


def _plan(batch, input_dim, budget, mode=None):
    """Pick execution mode + batch-tile size from the VMEM budget."""
    b8 = _ru(max(batch, 8), 8)
    id_p, h1_p, h2_p, h3_p = (_ru(d, LANE) for d in (input_dim, H1, H2, H3))
    # double-buffered constant blocks (weights / biases / BN params)
    const2 = 2 * F32 * (_ru(input_dim, 8) * h1_p + 3 * 8 * h1_p +
                        _ru(H1, 8) * h2_p + 3 * 8 * h2_p + _ru(H2, 8) * h3_p)
    margin = 2 << 20
    per_mode = {
        # (resident VMEM bytes per padded batch row, streamed bytes per tile row)
        "fused3":   ((h1_p + h2_p) * F32, 2 * (id_p + h3_p) * F32),
        "fused23":  (h2_p * F32, 2 * max(id_p + h1_p, h1_p + h3_p) * F32),
        "streamed": (0, 2 * max(id_p + h1_p, h1_p + h2_p) * F32),
    }

    def tile_for(m):
        res_row, stream_row = per_mode[m]
        avail = budget - const2 - margin - b8 * res_row
        coeff = res_row + stream_row
        if avail < 8 * coeff:
            return 0
        return min(b8, (avail // coeff) // 8 * 8)

    if mode is not None:
        return mode, max(tile_for(mode), 8)
    for m in ("fused3", "fused23", "streamed"):
        t = tile_for(m)
        if t >= 8:
            return m, t
    return "streamed", 8


# ----------------------------------------------------------------------------
# Wrapper
# ----------------------------------------------------------------------------
def domain_classifier(x, params, *, tile_b=None, mode=None, x_dtype=None):
    """DomainClassifier forward. x: (B, input_dim) f32 -> (B, 1) f32.

    mode: None (auto), "fused3", "fused23" or "streamed".
    x_dtype: optional narrower streaming dtype for x / W1 (e.g. jnp.bfloat16).
    """
    batch, input_dim = x.shape
    budget = int(_vmem_budget_bytes())
    auto_mode, auto_tile = _plan(batch, input_dim, budget, mode)
    mode = auto_mode
    if tile_b is None:
        tile_b = auto_tile
    mult = 8
    if x_dtype is not None and jnp.dtype(x_dtype).itemsize < 4:
        mult = 32 // jnp.dtype(x_dtype).itemsize     # sublane packing granule
    tile_b = max(mult, (int(tile_b) // mult) * mult)
    n_tiles = -(-batch // tile_b)
    b_pad = n_tiles * tile_b

    p = dict(params)
    if x_dtype is not None:
        x = x.astype(x_dtype)
        p["w1"] = p["w1"].astype(x_dtype)
    if b_pad != batch:
        x = jnp.pad(x, ((0, b_pad - batch), (0, 0)))

    f32 = jnp.float32
    cp2 = pltpu.CompilerParams(dimension_semantics=("arbitrary", "arbitrary"),
                               vmem_limit_bytes=budget)
    cp_red = pltpu.CompilerParams(dimension_semantics=("arbitrary",),
                                  vmem_limit_bytes=budget)
    cp_par = pltpu.CompilerParams(dimension_semantics=("parallel",),
                                  vmem_limit_bytes=budget)
    last = n_tiles - 1
    const2d = lambda *_: (0, 0)

    # ---- preferred path: everything fused, h1/h2 resident in VMEM -----------
    if mode == "fused3":
        out = pl.pallas_call(
            functools.partial(_fused3_kernel, tile_b=tile_b, batch=batch),
            grid=(3, n_tiles),
            in_specs=[
                pl.BlockSpec((tile_b, input_dim),
                             lambda ph, t: (jnp.where(ph == 0, t, last), 0)),
                pl.BlockSpec((input_dim, H1), const2d),
                pl.BlockSpec((1, H1), const2d),
                pl.BlockSpec((1, H1), const2d),
                pl.BlockSpec((1, H1), const2d),
                pl.BlockSpec((H1, H2), const2d),
                pl.BlockSpec((1, H2), const2d),
                pl.BlockSpec((1, H2), const2d),
                pl.BlockSpec((1, H2), const2d),
                pl.BlockSpec((H2, H3), const2d),
                pl.BlockSpec(memory_space=pltpu.MemorySpace.SMEM),   # b3 scalar
            ],
            out_specs=pl.BlockSpec((tile_b, H3),
                                   lambda ph, t: (jnp.where(ph == 2, t, 0), 0)),
            out_shape=jax.ShapeDtypeStruct((b_pad, H3), f32),
            scratch_shapes=[
                pltpu.VMEM((n_tiles, tile_b, H1), f32),     # resident h1
                pltpu.VMEM((n_tiles, tile_b, H2), f32),     # resident h2
                pltpu.VMEM((1, H1), f32), pltpu.VMEM((1, H1), f32),   # s1, q1
                pltpu.VMEM((1, H2), f32), pltpu.VMEM((1, H2), f32),   # s2, q2
                pltpu.VMEM((1, H1), f32), pltpu.VMEM((1, H1), f32),   # sc1, sh1
                pltpu.VMEM((1, H2), f32), pltpu.VMEM((1, H2), f32),   # sc2, sh2
            ],
            compiler_params=cp2,
        )(x, p["w1"], p["b1"], p["g1"], p["be1"],
          p["w2"], p["b2"], p["g2"], p["be2"], p["w3"], p["b3"])
        return out[:batch]

    # ---- pass 1 (streamed): Linear(input_dim -> 64) + stats of h1 -----------
    h1, s1, q1 = pl.pallas_call(
        functools.partial(_pass1_kernel, tile_b=tile_b, batch=batch),
        grid=(n_tiles,),
        in_specs=[
            pl.BlockSpec((tile_b, input_dim), lambda t: (t, 0)),
            pl.BlockSpec((input_dim, H1), lambda t: (0, 0)),
            pl.BlockSpec((1, H1), lambda t: (0, 0)),
        ],
        out_specs=(
            pl.BlockSpec((tile_b, H1), lambda t: (t, 0)),
            pl.BlockSpec((1, H1), lambda t: (0, 0)),
            pl.BlockSpec((1, H1), lambda t: (0, 0)),
        ),
        out_shape=(
            jax.ShapeDtypeStruct((b_pad, H1), f32),
            jax.ShapeDtypeStruct((1, H1), f32),
            jax.ShapeDtypeStruct((1, H1), f32),
        ),
        compiler_params=cp_red,
    )(x, p["w1"], p["b1"])
    sc1, sh1 = _fold_bn(s1, q1, batch, p["g1"], p["be1"])

    # ---- layers 2+3 fused with h2 resident in VMEM ---------------------------
    if mode == "fused23":
        out = pl.pallas_call(
            functools.partial(_fused23_kernel, tile_b=tile_b, batch=batch),
            grid=(2, n_tiles),
            in_specs=[
                pl.BlockSpec((tile_b, H1),
                             lambda ph, t: (jnp.where(ph == 0, t, last), 0)),
                pl.BlockSpec((1, H1), const2d),
                pl.BlockSpec((1, H1), const2d),
                pl.BlockSpec((H1, H2), const2d),
                pl.BlockSpec((1, H2), const2d),
                pl.BlockSpec((1, H2), const2d),
                pl.BlockSpec((1, H2), const2d),
                pl.BlockSpec((H2, H3), const2d),
                pl.BlockSpec(memory_space=pltpu.MemorySpace.SMEM),   # b3 scalar
            ],
            out_specs=pl.BlockSpec((tile_b, H3),
                                   lambda ph, t: (jnp.where(ph == 1, t, 0), 0)),
            out_shape=jax.ShapeDtypeStruct((b_pad, H3), f32),
            scratch_shapes=[
                pltpu.VMEM((n_tiles, tile_b, H2), f32),     # resident h2
                pltpu.VMEM((1, H2), f32), pltpu.VMEM((1, H2), f32),   # s2, q2
                pltpu.VMEM((1, H2), f32), pltpu.VMEM((1, H2), f32),   # sc2, sh2
            ],
            compiler_params=cp2,
        )(h1, sc1, sh1, p["w2"], p["b2"], p["g2"], p["be2"], p["w3"], p["b3"])
        return out[:batch]

    # ---- fully streamed fallback (any batch size) ----------------------------
    h2, s2, q2 = pl.pallas_call(
        functools.partial(_pass2_kernel, tile_b=tile_b, batch=batch),
        grid=(n_tiles,),
        in_specs=[
            pl.BlockSpec((tile_b, H1), lambda t: (t, 0)),
            pl.BlockSpec((1, H1), lambda t: (0, 0)),
            pl.BlockSpec((1, H1), lambda t: (0, 0)),
            pl.BlockSpec((H1, H2), lambda t: (0, 0)),
            pl.BlockSpec((1, H2), lambda t: (0, 0)),
        ],
        out_specs=(
            pl.BlockSpec((tile_b, H2), lambda t: (t, 0)),
            pl.BlockSpec((1, H2), lambda t: (0, 0)),
            pl.BlockSpec((1, H2), lambda t: (0, 0)),
        ),
        out_shape=(
            jax.ShapeDtypeStruct((b_pad, H2), f32),
            jax.ShapeDtypeStruct((1, H2), f32),
            jax.ShapeDtypeStruct((1, H2), f32),
        ),
        compiler_params=cp_red,
    )(h1, sc1, sh1, p["w2"], p["b2"])
    sc2, sh2 = _fold_bn(s2, q2, batch, p["g2"], p["be2"])

    out = pl.pallas_call(
        _pass3_kernel,
        grid=(n_tiles,),
        in_specs=[
            pl.BlockSpec((tile_b, H2), lambda t: (t, 0)),
            pl.BlockSpec((1, H2), lambda t: (0, 0)),
            pl.BlockSpec((1, H2), lambda t: (0, 0)),
            pl.BlockSpec((H2, H3), lambda t: (0, 0)),
            pl.BlockSpec(memory_space=pltpu.MemorySpace.SMEM),
        ],
        out_specs=pl.BlockSpec((tile_b, H3), lambda t: (t, 0)),
        out_shape=jax.ShapeDtypeStruct((b_pad, H3), f32),
        compiler_params=cp_par,
    )(h2, sc2, sh2, p["w3"], p["b3"])
    return out[:batch]


# ----------------------------------------------------------------------------
# Parameters / reference
# ----------------------------------------------------------------------------
def init_params(key, input_dim):
    """Deterministic synthetic parameters (shapes match the torch module)."""
    ks = jax.random.split(key, 6)

    def lin(kw, kb, fan_in, fan_out):
        bound = 1.0 / jnp.sqrt(fan_in)
        w = jax.random.uniform(kw, (fan_in, fan_out), jnp.float32, -bound, bound)
        b = jax.random.uniform(kb, (1, fan_out), jnp.float32, -bound, bound)
        return w, b

    w1, b1 = lin(ks[0], ks[1], input_dim, H1)
    w2, b2 = lin(ks[2], ks[3], H1, H2)
    w3, b3 = lin(ks[4], ks[5], H2, H3)
    return dict(
        w1=w1, b1=b1, g1=jnp.ones((1, H1), jnp.float32), be1=jnp.zeros((1, H1), jnp.float32),
        w2=w2, b2=b2, g2=jnp.ones((1, H2), jnp.float32), be2=jnp.zeros((1, H2), jnp.float32),
        w3=w3, b3=b3,
    )


def reference(x, p):
    """Pure-JAX reference of the same forward pass (training-mode BN)."""
    def bn_relu(h, g, b):
        mu = jnp.mean(h, axis=0, keepdims=True)
        var = jnp.mean((h - mu) ** 2, axis=0, keepdims=True)
        return jnp.maximum((h - mu) / jnp.sqrt(var + EPS) * g + b, 0.0)
    h = bn_relu(x @ p["w1"] + p["b1"], p["g1"], p["be1"])
    h = bn_relu(h @ p["w2"] + p["b2"], p["g2"], p["be2"])
    return h @ p["w3"] + p["b3"]


if __name__ == "__main__":
    key = jax.random.PRNGKey(0)
    k_x, k_p = jax.random.split(key)

    batch, input_dim = 200, 48   # small; deliberately not a multiple of a tile
    x = jax.random.normal(k_x, (batch, input_dim), jnp.float32)
    params = init_params(k_p, input_dim)
    ref = reference(x, params)

    # 1) Auto plan -> fully fused single kernel (h1/h2 resident in VMEM).
    out = jax.block_until_ready(domain_classifier(x, params))
    assert out.shape == (batch, 1)
    assert jnp.allclose(out, ref, atol=1e-4, rtol=1e-4), "fused3 (auto) mismatch"

    # 2) Fused kernel, forced multi-tile (exercises masking + dynamic scratch).
    out = jax.block_until_ready(domain_classifier(x, params, mode="fused3", tile_b=64))
    assert jnp.allclose(out, ref, atol=1e-4, rtol=1e-4), "fused3 (tiled) mismatch"

    # 3) Capacity fallback: streamed pass-1 + fused layers 2/3.
    out = jax.block_until_ready(domain_classifier(x, params, mode="fused23", tile_b=64))
    assert jnp.allclose(out, ref, atol=1e-4, rtol=1e-4), "fused23 mismatch"

    # 4) Fully streamed fallback (original 3-pass structure).
    out = jax.block_until_ready(domain_classifier(x, params, mode="streamed", tile_b=64))
    assert jnp.allclose(out, ref, atol=1e-4, rtol=1e-4), "streamed mismatch"

    # 5) Optional bf16 x / W1 streaming (compile coverage; relaxed numerics).
    out_bf16 = jax.block_until_ready(domain_classifier(x, params, x_dtype=jnp.bfloat16))
    assert out_bf16.shape == (batch, 1)
    assert bool(jnp.all(jnp.isfinite(out_bf16)))

    print("KERNEL_OK")
</pallas_src>

<mosaic_0001>
module attributes {stable_mosaic.version = 11 : i64} {
  func.func @_fused3_kernel(%arg0: i32, %arg1: i32, %arg2: memref<200x48xf32, #tpu.memory_space<vmem>>, %arg3: memref<48x64xf32, #tpu.memory_space<vmem>>, %arg4: memref<1x64xf32, #tpu.memory_space<vmem>>, %arg5: memref<1x64xf32, #tpu.memory_space<vmem>>, %arg6: memref<1x64xf32, #tpu.memory_space<vmem>>, %arg7: memref<64x16xf32, #tpu.memory_space<vmem>>, %arg8: memref<1x16xf32, #tpu.memory_space<vmem>>, %arg9: memref<1x16xf32, #tpu.memory_space<vmem>>, %arg10: memref<1x16xf32, #tpu.memory_space<vmem>>, %arg11: memref<16x1xf32, #tpu.memory_space<vmem>>, %arg12: memref<1x1xf32, #tpu.memory_space<smem>>, %arg13: memref<200x1xf32, #tpu.memory_space<vmem>>, %arg14: memref<1x200x64xf32, #tpu.memory_space<vmem>>, %arg15: memref<1x200x16xf32, #tpu.memory_space<vmem>>, %arg16: memref<1x64xf32, #tpu.memory_space<vmem>>, %arg17: memref<1x64xf32, #tpu.memory_space<vmem>>, %arg18: memref<1x16xf32, #tpu.memory_space<vmem>>, %arg19: memref<1x16xf32, #tpu.memory_space<vmem>>, %arg20: memref<1x64xf32, #tpu.memory_space<vmem>>, %arg21: memref<1x64xf32, #tpu.memory_space<vmem>>, %arg22: memref<1x16xf32, #tpu.memory_space<vmem>>, %arg23: memref<1x16xf32, #tpu.memory_space<vmem>>) attributes {dimension_semantics = [#tpu.dimension_semantics<arbitrary>, #tpu.dimension_semantics<arbitrary>], iteration_bounds = array<i64: 3, 1>, scalar_prefetch = 0 : i64, scratch_operands = 10 : i64, tpu.core_type = #tpu.core_type<tc>, window_params = [{transform_indices = @transform_0, window_bounds = array<i64: 200, 48>}, {pipeline_mode = #tpu.pipeline_mode<synchronous>, transform_indices = @transform_1, window_bounds = array<i64: 48, 64>}, {pipeline_mode = #tpu.pipeline_mode<synchronous>, transform_indices = @transform_2, window_bounds = array<i64: 1, 64>}, {pipeline_mode = #tpu.pipeline_mode<synchronous>, transform_indices = @transform_3, window_bounds = array<i64: 1, 64>}, {pipeline_mode = #tpu.pipeline_mode<synchronous>, transform_indices = @transform_4, window_bounds = array<i64: 1, 64>}, {pipeline_mode = #tpu.pipeline_mode<synchronous>, transform_indices = @transform_5, window_bounds = array<i64: 64, 16>}, {pipeline_mode = #tpu.pipeline_mode<synchronous>, transform_indices = @transform_6, window_bounds = array<i64: 1, 16>}, {pipeline_mode = #tpu.pipeline_mode<synchronous>, transform_indices = @transform_7, window_bounds = array<i64: 1, 16>}, {pipeline_mode = #tpu.pipeline_mode<synchronous>, transform_indices = @transform_8, window_bounds = array<i64: 1, 16>}, {pipeline_mode = #tpu.pipeline_mode<synchronous>, transform_indices = @transform_9, window_bounds = array<i64: 16, 1>}, {transform_indices = @transform_10, window_bounds = array<i64: 1, 1>}, {transform_indices = @transform_11, window_bounds = array<i64: 200, 1>}]} {
    %0 = tpu.iota {dimensions = array<i32: 1>} : vector<1x200xi32>
    %c200_i32 = arith.constant 200 : i32
    %1 = arith.muli %arg1, %c200_i32 : i32
    %2 = vector.broadcast %1 : i32 to vector<1x200xi32>
    %3 = arith.addi %0, %2 : vector<1x200xi32>
    %c200_i32_0 = arith.constant 200 : i32
    %4 = vector.broadcast %c200_i32_0 : i32 to vector<1x200xi32>
    %5 = arith.cmpi slt, %3, %4 : vector<1x200xi32>
    %6 = arith.extui %5 : vector<1x200xi1> to vector<1x200xi32>
    %7 = arith.sitofp %6 : vector<1x200xi32> to vector<1x200xf32>
    %c0_i32 = arith.constant 0 : i32
    %8 = arith.cmpi eq, %arg0, %c0_i32 : i32
    %c0_i32_1 = arith.constant 0 : i32
    %9 = arith.cmpi eq, %arg1, %c0_i32_1 : i32
    %10 = arith.andi %8, %9 : i1
    %11 = arith.extui %10 : i1 to i32
    %c0_i32_2 = arith.constant 0 : i32
    %12 = arith.cmpi ne, %11, %c0_i32_2 : i32
    scf.if %12 {
      %cst = arith.constant 0.000000e+00 : f32
      %32 = vector.broadcast %cst : f32 to vector<1x64xf32>
      %c0 = arith.constant 0 : index
      %c0_13 = arith.constant 0 : index
      %33 = vector.load %arg16[%c0, %c0_13] : memref<1x64xf32, #tpu.memory_space<vmem>>, vector<1x64xf32>
      tpu.vector_store %arg16[%c0, %c0_13], %32 {strides = array<i32>} : memref<1x64xf32, #tpu.memory_space<vmem>>, vector<1x64xf32>,
      %cst_14 = arith.constant 0.000000e+00 : f32
      %34 = vector.broadcast %cst_14 : f32 to vector<1x64xf32>
      %c0_15 = arith.constant 0 : index
      %c0_16 = arith.constant 0 : index
      %35 = vector.load %arg17[%c0_15, %c0_16] : memref<1x64xf32, #tpu.memory_space<vmem>>, vector<1x64xf32>
      tpu.vector_store %arg17[%c0_15, %c0_16], %34 {strides = array<i32>} : memref<1x64xf32, #tpu.memory_space<vmem>>, vector<1x64xf32>,
      %cst_17 = arith.constant 0.000000e+00 : f32
      %36 = vector.broadcast %cst_17 : f32 to vector<1x16xf32>
      %c0_18 = arith.constant 0 : index
      %c0_19 = arith.constant 0 : index
      %37 = vector.load %arg18[%c0_18, %c0_19] : memref<1x16xf32, #tpu.memory_space<vmem>>, vector<1x16xf32>
      tpu.vector_store %arg18[%c0_18, %c0_19], %36 {strides = array<i32>} : memref<1x16xf32, #tpu.memory_space<vmem>>, vector<1x16xf32>,
      %cst_20 = arith.constant 0.000000e+00 : f32
      %38 = vector.broadcast %cst_20 : f32 to vector<1x16xf32>
      %c0_21 = arith.constant 0 : index
      %c0_22 = arith.constant 0 : index
      %39 = vector.load %arg19[%c0_21, %c0_22] : memref<1x16xf32, #tpu.memory_space<vmem>>, vector<1x16xf32>
      tpu.vector_store %arg19[%c0_21, %c0_22], %38 {strides = array<i32>} : memref<1x16xf32, #tpu.memory_space<vmem>>, vector<1x16xf32>,
    } else {
    }
    %c0_i32_3 = arith.constant 0 : i32
    %13 = arith.cmpi eq, %arg0, %c0_i32_3 : i32
    %14 = arith.extui %13 : i1 to i32
    %c0_i32_4 = arith.constant 0 : i32
    %15 = arith.cmpi ne, %14, %c0_i32_4 : i32
    scf.if %15 {
      %c0 = arith.constant 0 : index
      %c0_13 = arith.constant 0 : index
      %32 = vector.load %arg2[%c0, %c0_13] : memref<200x48xf32, #tpu.memory_space<vmem>>, vector<200x48xf32>
      %c0_14 = arith.constant 0 : index
      %c0_15 = arith.constant 0 : index
      %33 = vector.load %arg3[%c0_14, %c0_15] : memref<48x64xf32, #tpu.memory_space<vmem>>, vector<48x64xf32>
      %cst = arith.constant dense<0.000000e+00> : vector<200x64xf32>
      %34 = tpu.matmul %32, %33, %cst {dimension_numbers = #tpu.dot_dimension_numbers<[1], [0], [0], [1], [0, 0, 1, 1], [], []>} : vector<200x48xf32>, vector<48x64xf32>, vector<200x64xf32> -> vector<200x64xf32>
      %c0_16 = arith.constant 0 : index
      %c0_17 = arith.constant 0 : index
      %35 = vector.load %arg4[%c0_16, %c0_17] : memref<1x64xf32, #tpu.memory_space<vmem>>, vector<1x64xf32>
      %36 = vector.broadcast %35 : vector<1x64xf32> to vector<200x64xf32>
      %37 = arith.addf %34, %36 : vector<200x64xf32>
      %38 = arith.index_cast %arg1 : i32 to index
      %c0_18 = arith.constant 0 : index
      %c0_19 = arith.constant 0 : index
      %39 = vector.load %arg14[%38, %c0_18, %c0_19] : memref<1x200x64xf32, #tpu.memory_space<vmem>>, vector<1x200x64xf32>
      %40 = vector.shape_cast %39 : vector<1x200x64xf32> to vector<200x64xf32>
      %41 = vector.shape_cast %37 : vector<200x64xf32> to vector<1x200x64xf32>
      tpu.vector_store %arg14[%38, %c0_18, %c0_19], %41 {strides = array<i32>} : memref<1x200x64xf32, #tpu.memory_space<vmem>>, vector<1x200x64xf32>,
      %c0_20 = arith.constant 0 : index
      %c0_21 = arith.constant 0 : index
      %42 = vector.load %arg16[%c0_20, %c0_21] : memref<1x64xf32, #tpu.memory_space<vmem>>, vector<1x64xf32>
      %cst_22 = arith.constant dense<0.000000e+00> : vector<1x64xf32>
      %43 = tpu.matmul %7, %37, %cst_22 {dimension_numbers = #tpu.dot_dimension_numbers<[1], [0], [0], [1], [0, 0, 1, 1], [], []>} : vector<1x200xf32>, vector<200x64xf32>, vector<1x64xf32> -> vector<1x64xf32>
      %44 = arith.addf %42, %43 : vector<1x64xf32>
      %c0_23 = arith.constant 0 : index
      %c0_24 = arith.constant 0 : index
      %45 = vector.load %arg16[%c0_23, %c0_24] : memref<1x64xf32, #tpu.memory_space<vmem>>, vector<1x64xf32>
      tpu.vector_store %arg16[%c0_23, %c0_24], %44 {strides = array<i32>} : memref<1x64xf32, #tpu.memory_space<vmem>>, vector<1x64xf32>,
      %c0_25 = arith.constant 0 : index
      %c0_26 = arith.constant 0 : index
      %46 = vector.load %arg17[%c0_25, %c0_26] : memref<1x64xf32, #tpu.memory_space<vmem>>, vector<1x64xf32>
      %47 = arith.mulf %37, %37 : vector<200x64xf32>
      %cst_27 = arith.constant dense<0.000000e+00> : vector<1x64xf32>
      %48 = tpu.matmul %7, %47, %cst_27 {dimension_numbers = #tpu.dot_dimension_numbers<[1], [0], [0], [1], [0, 0, 1, 1], [], []>} : vector<1x200xf32>, vector<200x64xf32>, vector<1x64xf32> -> vector<1x64xf32>
      %49 = arith.addf %46, %48 : vector<1x64xf32>
      %c0_28 = arith.constant 0 : index
      %c0_29 = arith.constant 0 : index
      %50 = vector.load %arg17[%c0_28, %c0_29] : memref<1x64xf32, #tpu.memory_space<vmem>>, vector<1x64xf32>
      tpu.vector_store %arg17[%c0_28, %c0_29], %49 {strides = array<i32>} : memref<1x64xf32, #tpu.memory_space<vmem>>, vector<1x64xf32>,
    } else {
    }
    %c1_i32 = arith.constant 1 : i32
    %16 = arith.cmpi eq, %arg0, %c1_i32 : i32
    %c0_i32_5 = arith.constant 0 : i32
    %17 = arith.cmpi eq, %arg1, %c0_i32_5 : i32
    %18 = arith.andi %16, %17 : i1
    %19 = arith.extui %18 : i1 to i32
    %c0_i32_6 = arith.constant 0 : i32
    %20 = arith.cmpi ne, %19, %c0_i32_6 : i32
    scf.if %20 {
      %c0 = arith.constant 0 : index
      %c0_13 = arith.constant 0 : index
      %32 = vector.load %arg16[%c0, %c0_13] : memref<1x64xf32, #tpu.memory_space<vmem>>, vector<1x64xf32>
      %c0_14 = arith.constant 0 : index
      %c0_15 = arith.constant 0 : index
      %33 = vector.load %arg17[%c0_14, %c0_15] : memref<1x64xf32, #tpu.memory_space<vmem>>, vector<1x64xf32>
      %c0_16 = arith.constant 0 : index
      %c0_17 = arith.constant 0 : index
      %34 = vector.load %arg5[%c0_16, %c0_17] : memref<1x64xf32, #tpu.memory_space<vmem>>, vector<1x64xf32>
      %c0_18 = arith.constant 0 : index
      %c0_19 = arith.constant 0 : index
      %35 = vector.load %arg6[%c0_18, %c0_19] : memref<1x64xf32, #tpu.memory_space<vmem>>, vector<1x64xf32>
      %cst = arith.constant 5.000000e-03 : f32
      %36 = vector.broadcast %cst : f32 to vector<1x64xf32>
      %37 = arith.mulf %32, %36 : vector<1x64xf32>
      %cst_20 = arith.constant 5.000000e-03 : f32
      %38 = vector.broadcast %cst_20 : f32 to vector<1x64xf32>
      %39 = arith.mulf %33, %38 : vector<1x64xf32>
      %40 = arith.mulf %37, %37 : vector<1x64xf32>
      %41 = arith.subf %39, %40 : vector<1x64xf32>
      %cst_21 = arith.constant 0.000000e+00 : f32
      %42 = vector.broadcast %cst_21 : f32 to vector<1x64xf32>
      %43 = arith.maximumf %41, %42 : vector<1x64xf32>
      %cst_22 = arith.constant 9.99999974E-6 : f32
      %44 = vector.broadcast %cst_22 : f32 to vector<1x64xf32>
      %45 = arith.addf %43, %44 : vector<1x64xf32>
      %46 = math.rsqrt %45 : vector<1x64xf32>
      %47 = arith.mulf %34, %46 : vector<1x64xf32>
      %48 = arith.mulf %37, %47 : vector<1x64xf32>
      %49 = arith.subf %35, %48 : vector<1x64xf32>
      %c0_23 = arith.constant 0 : index
      %c0_24 = arith.constant 0 : index
      %50 = vector.load %arg20[%c0_23, %c0_24] : memref<1x64xf32, #tpu.memory_space<vmem>>, vector<1x64xf32>
      tpu.vector_store %arg20[%c0_23, %c0_24], %47 {strides = array<i32>} : memref<1x64xf32, #tpu.memory_space<vmem>>, vector<1x64xf32>,
      %c0_25 = arith.constant 0 : index
      %c0_26 = arith.constant 0 : index
      %51 = vector.load %arg21[%c0_25, %c0_26] : memref<1x64xf32, #tpu.memory_space<vmem>>, vector<1x64xf32>
      tpu.vector_store %arg21[%c0_25, %c0_26], %49 {strides = array<i32>} : memref<1x64xf32, #tpu.memory_space<vmem>>, vector<1x64xf32>,
    } else {
    }
    %c1_i32_7 = arith.constant 1 : i32
    %21 = arith.cmpi eq, %arg0, %c1_i32_7 : i32
    %22 = arith.extui %21 : i1 to i32
    %c0_i32_8 = arith.constant 0 : i32
    %23 = arith.cmpi ne, %22, %c0_i32_8 : i32
    scf.if %23 {
      %32 = arith.index_cast %arg1 : i32 to index
      %c0 = arith.constant 0 : index
      %c0_13 = arith.constant 0 : index
      %33 = vector.load %arg14[%32, %c0, %c0_13] : memref<1x200x64xf32, #tpu.memory_space<vmem>>, vector<1x200x64xf32>
      %34 = vector.shape_cast %33 : vector<1x200x64xf32> to vector<200x64xf32>
      %c0_14 = arith.constant 0 : index
      %c0_15 = arith.constant 0 : index
      %35 = vector.load %arg20[%c0_14, %c0_15] : memref<1x64xf32, #tpu.memory_space<vmem>>, vector<1x64xf32>
      %36 = vector.broadcast %35 : vector<1x64xf32> to vector<200x64xf32>
      %37 = arith.mulf %34, %36 : vector<200x64xf32>
      %c0_16 = arith.constant 0 : index
      %c0_17 = arith.constant 0 : index
      %38 = vector.load %arg21[%c0_16, %c0_17] : memref<1x64xf32, #tpu.memory_space<vmem>>, vector<1x64xf32>
      %39 = vector.broadcast %38 : vector<1x64xf32> to vector<200x64xf32>
      %40 = arith.addf %37, %39 : vector<200x64xf32>
      %cst = arith.constant 0.000000e+00 : f32
      %41 = vector.broadcast %cst : f32 to vector<200x64xf32>
      %42 = arith.maximumf %40, %41 : vector<200x64xf32>
      %c0_18 = arith.constant 0 : index
      %c0_19 = arith.constant 0 : index
      %43 = vector.load %arg7[%c0_18, %c0_19] : memref<64x16xf32, #tpu.memory_space<vmem>>, vector<64x16xf32>
      %cst_20 = arith.constant dense<0.000000e+00> : vector<200x16xf32>
      %44 = tpu.matmul %42, %43, %cst_20 {dimension_numbers = #tpu.dot_dimension_numbers<[1], [0], [0], [1], [0, 0, 1, 1], [], []>} : vector<200x64xf32>, vector<64x16xf32>, vector<200x16xf32> -> vector<200x16xf32>
      %c0_21 = arith.constant 0 : index
      %c0_22 = arith.constant 0 : index
      %45 = vector.load %arg8[%c0_21, %c0_22] : memref<1x16xf32, #tpu.memory_space<vmem>>, vector<1x16xf32>
      %46 = vector.broadcast %45 : vector<1x16xf32> to vector<200x16xf32>
      %47 = arith.addf %44, %46 : vector<200x16xf32>
      %48 = arith.index_cast %arg1 : i32 to index
      %c0_23 = arith.constant 0 : index
      %c0_24 = arith.constant 0 : index
      %49 = vector.load %arg15[%48, %c0_23, %c0_24] : memref<1x200x16xf32, #tpu.memory_space<vmem>>, vector<1x200x16xf32>
      %50 = vector.shape_cast %49 : vector<1x200x16xf32> to vector<200x16xf32>
      %51 = vector.shape_cast %47 : vector<200x16xf32> to vector<1x200x16xf32>
      tpu.vector_store %arg15[%48, %c0_23, %c0_24], %51 {strides = array<i32>} : memref<1x200x16xf32, #tpu.memory_space<vmem>>, vector<1x200x16xf32>,
      %c0_25 = arith.constant 0 : index
      %c0_26 = arith.constant 0 : index
      %52 = vector.load %arg18[%c0_25, %c0_26] : memref<1x16xf32, #tpu.memory_space<vmem>>, vector<1x16xf32>
      %cst_27 = arith.constant dense<0.000000e+00> : vector<1x16xf32>
      %53 = tpu.matmul %7, %47, %cst_27 {dimension_numbers = #tpu.dot_dimension_numbers<[1], [0], [0], [1], [0, 0, 1, 1], [], []>} : vector<1x200xf32>, vector<200x16xf32>, vector<1x16xf32> -> vector<1x16xf32>
      %54 = arith.addf %52, %53 : vector<1x16xf32>
      %c0_28 = arith.constant 0 : index
      %c0_29 = arith.constant 0 : index
      %55 = vector.load %arg18[%c0_28, %c0_29] : memref<1x16xf32, #tpu.memory_space<vmem>>, vector<1x16xf32>
      tpu.vector_store %arg18[%c0_28, %c0_29], %54 {strides = array<i32>} : memref<1x16xf32, #tpu.memory_space<vmem>>, vector<1x16xf32>,
      %c0_30 = arith.constant 0 : index
      %c0_31 = arith.constant 0 : index
      %56 = vector.load %arg19[%c0_30, %c0_31] : memref<1x16xf32, #tpu.memory_space<vmem>>, vector<1x16xf32>
      %57 = arith.mulf %47, %47 : vector<200x16xf32>
      %cst_32 = arith.constant dense<0.000000e+00> : vector<1x16xf32>
      %58 = tpu.matmul %7, %57, %cst_32 {dimension_numbers = #tpu.dot_dimension_numbers<[1], [0], [0], [1], [0, 0, 1, 1], [], []>} : vector<1x200xf32>, vector<200x16xf32>, vector<1x16xf32> -> vector<1x16xf32>
      %59 = arith.addf %56, %58 : vector<1x16xf32>
      %c0_33 = arith.constant 0 : index
      %c0_34 = arith.constant 0 : index
      %60 = vector.load %arg19[%c0_33, %c0_34] : memref<1x16xf32, #tpu.memory_space<vmem>>, vector<1x16xf32>
      tpu.vector_store %arg19[%c0_33, %c0_34], %59 {strides = array<i32>} : memref<1x16xf32, #tpu.memory_space<vmem>>, vector<1x16xf32>,
    } else {
    }
    %c2_i32 = arith.constant 2 : i32
    %24 = arith.cmpi eq, %arg0, %c2_i32 : i32
    %c0_i32_9 = arith.constant 0 : i32
    %25 = arith.cmpi eq, %arg1, %c0_i32_9 : i32
    %26 = arith.andi %24, %25 : i1
    %27 = arith.extui %26 : i1 to i32
    %c0_i32_10 = arith.constant 0 : i32
    %28 = arith.cmpi ne, %27, %c0_i32_10 : i32
    scf.if %28 {
      %c0 = arith.constant 0 : index
      %c0_13 = arith.constant 0 : index
      %32 = vector.load %arg18[%c0, %c0_13] : memref<1x16xf32, #tpu.memory_space<vmem>>, vector<1x16xf32>
      %c0_14 = arith.constant 0 : index
      %c0_15 = arith.constant 0 : index
      %33 = vector.load %arg19[%c0_14, %c0_15] : memref<1x16xf32, #tpu.memory_space<vmem>>, vector<1x16xf32>
      %c0_16 = arith.constant 0 : index
      %c0_17 = arith.constant 0 : index
      %34 = vector.load %arg9[%c0_16, %c0_17] : memref<1x16xf32, #tpu.memory_space<vmem>>, vector<1x16xf32>
      %c0_18 = arith.constant 0 : index
      %c0_19 = arith.constant 0 : index
      %35 = vector.load %arg10[%c0_18, %c0_19] : memref<1x16xf32, #tpu.memory_space<vmem>>, vector<1x16xf32>
      %cst = arith.constant 5.000000e-03 : f32
      %36 = vector.broadcast %cst : f32 to vector<1x16xf32>
      %37 = arith.mulf %32, %36 : vector<1x16xf32>
      %cst_20 = arith.constant 5.000000e-03 : f32
      %38 = vector.broadcast %cst_20 : f32 to vector<1x16xf32>
      %39 = arith.mulf %33, %38 : vector<1x16xf32>
      %40 = arith.mulf %37, %37 : vector<1x16xf32>
      %41 = arith.subf %39, %40 : vector<1x16xf32>
      %cst_21 = arith.constant 0.000000e+00 : f32
      %42 = vector.broadcast %cst_21 : f32 to vector<1x16xf32>
      %43 = arith.maximumf %41, %42 : vector<1x16xf32>
      %cst_22 = arith.constant 9.99999974E-6 : f32
      %44 = vector.broadcast %cst_22 : f32 to vector<1x16xf32>
      %45 = arith.addf %43, %44 : vector<1x16xf32>
      %46 = math.rsqrt %45 : vector<1x16xf32>
      %47 = arith.mulf %34, %46 : vector<1x16xf32>
      %48 = arith.mulf %37, %47 : vector<1x16xf32>
      %49 = arith.subf %35, %48 : vector<1x16xf32>
      %c0_23 = arith.constant 0 : index
      %c0_24 = arith.constant 0 : index
      %50 = vector.load %arg22[%c0_23, %c0_24] : memref<1x16xf32, #tpu.memory_space<vmem>>, vector<1x16xf32>
      tpu.vector_store %arg22[%c0_23, %c0_24], %47 {strides = array<i32>} : memref<1x16xf32, #tpu.memory_space<vmem>>, vector<1x16xf32>,
      %c0_25 = arith.constant 0 : index
      %c0_26 = arith.constant 0 : index
      %51 = vector.load %arg23[%c0_25, %c0_26] : memref<1x16xf32, #tpu.memory_space<vmem>>, vector<1x16xf32>
      tpu.vector_store %arg23[%c0_25, %c0_26], %49 {strides = array<i32>} : memref<1x16xf32, #tpu.memory_space<vmem>>, vector<1x16xf32>,
    } else {
    }
    %c2_i32_11 = arith.constant 2 : i32
    %29 = arith.cmpi eq, %arg0, %c2_i32_11 : i32
    %30 = arith.extui %29 : i1 to i32
    %c0_i32_12 = arith.constant 0 : i32
    %31 = arith.cmpi ne, %30, %c0_i32_12 : i32
    scf.if %31 {
      %32 = arith.index_cast %arg1 : i32 to index
      %c0 = arith.constant 0 : index
      %c0_13 = arith.constant 0 : index
      %33 = vector.load %arg15[%32, %c0, %c0_13] : memref<1x200x16xf32, #tpu.memory_space<vmem>>, vector<1x200x16xf32>
      %34 = vector.shape_cast %33 : vector<1x200x16xf32> to vector<200x16xf32>
      %c0_14 = arith.constant 0 : index
      %c0_15 = arith.constant 0 : index
      %35 = vector.load %arg22[%c0_14, %c0_15] : memref<1x16xf32, #tpu.memory_space<vmem>>, vector<1x16xf32>
      %36 = vector.broadcast %35 : vector<1x16xf32> to vector<200x16xf32>
      %37 = arith.mulf %34, %36 : vector<200x16xf32>
      %c0_16 = arith.constant 0 : index
      %c0_17 = arith.constant 0 : index
      %38 = vector.load %arg23[%c0_16, %c0_17] : memref<1x16xf32, #tpu.memory_space<vmem>>, vector<1x16xf32>
      %39 = vector.broadcast %38 : vector<1x16xf32> to vector<200x16xf32>
      %40 = arith.addf %37, %39 : vector<200x16xf32>
      %cst = arith.constant 0.000000e+00 : f32
      %41 = vector.broadcast %cst : f32 to vector<200x16xf32>
      %42 = arith.maximumf %40, %41 : vector<200x16xf32>
      %c0_18 = arith.constant 0 : index
      %c0_19 = arith.constant 0 : index
      %43 = vector.load %arg11[%c0_18, %c0_19] : memref<16x1xf32, #tpu.memory_space<vmem>>, vector<16x1xf32>
      %cst_20 = arith.constant dense<0.000000e+00> : vector<200x1xf32>
      %44 = tpu.matmul %42, %43, %cst_20 {dimension_numbers = #tpu.dot_dimension_numbers<[1], [0], [0], [1], [0, 0, 1, 1], [], []>} : vector<200x16xf32>, vector<16x1xf32>, vector<200x1xf32> -> vector<200x1xf32>
      %c0_21 = arith.constant 0 : index
      %c0_22 = arith.constant 0 : index
      %45 = memref.load %arg12[%c0_21, %c0_22] : memref<1x1xf32, #tpu.memory_space<smem>>
      %46 = vector.broadcast %45 : f32 to vector<200x1xf32>
      %47 = arith.addf %44, %46 : vector<200x1xf32>
      %c0_23 = arith.constant 0 : index
      %c0_24 = arith.constant 0 : index
      %48 = vector.load %arg13[%c0_23, %c0_24] : memref<200x1xf32, #tpu.memory_space<vmem>>, vector<200x1xf32>
      tpu.vector_store %arg13[%c0_23, %c0_24], %47 {strides = array<i32>} : memref<200x1xf32, #tpu.memory_space<vmem>>, vector<200x1xf32>,
    } else {
    }
    return
  }
  func.func @transform_0(%arg0: i32, %arg1: i32) -> (i32, i32) {
    %c0_i32 = arith.constant 0 : i32
    %0 = arith.cmpi eq, %arg0, %c0_i32 : i32
    %c0_i32_0 = arith.constant 0 : i32
    %1 = arith.select %0, %arg1, %c0_i32_0 : i32
    %c0_i32_1 = arith.constant 0 : i32
    %c0_i32_2 = arith.constant 0 : i32
    return %1, %c0_i32_1 : i32, i32
  }
  func.func @transform_1(%arg0: i32, %arg1: i32) -> (i32, i32) {
    %c0_i32 = arith.constant 0 : i32
    %c0_i32_0 = arith.constant 0 : i32
    %c0_i32_1 = arith.constant 0 : i32
    return %c0_i32, %c0_i32_0 : i32, i32
  }
  func.func @transform_2(%arg0: i32, %arg1: i32) -> (i32, i32) {
    %c0_i32 = arith.constant 0 : i32
    %c0_i32_0 = arith.constant 0 : i32
    %c0_i32_1 = arith.constant 0 : i32
    return %c0_i32, %c0_i32_0 : i32, i32
  }
  func.func @transform_3(%arg0: i32, %arg1: i32) -> (i32, i32) {
    %c0_i32 = arith.constant 0 : i32
    %c0_i32_0 = arith.constant 0 : i32
    %c0_i32_1 = arith.constant 0 : i32
    return %c0_i32, %c0_i32_0 : i32, i32
  }
  func.func @transform_4(%arg0: i32, %arg1: i32) -> (i32, i32) {
    %c0_i32 = arith.constant 0 : i32
    %c0_i32_0 = arith.constant 0 : i32
    %c0_i32_1 = arith.constant 0 : i32
    return %c0_i32, %c0_i32_0 : i32, i32
  }
  func.func @transform_5(%arg0: i32, %arg1: i32) -> (i32, i32) {
    %c0_i32 = arith.constant 0 : i32
    %c0_i32_0 = arith.constant 0 : i32
    %c0_i32_1 = arith.constant 0 : i32
    return %c0_i32, %c0_i32_0 : i32, i32
  }
  func.func @transform_6(%arg0: i32, %arg1: i32) -> (i32, i32) {
    %c0_i32 = arith.constant 0 : i32
    %c0_i32_0 = arith.constant 0 : i32
    %c0_i32_1 = arith.constant 0 : i32
    return %c0_i32, %c0_i32_0 : i32, i32
  }
  func.func @transform_7(%arg0: i32, %arg1: i32) -> (i32, i32) {
    %c0_i32 = arith.constant 0 : i32
    %c0_i32_0 = arith.constant 0 : i32
    %c0_i32_1 = arith.constant 0 : i32
    return %c0_i32, %c0_i32_0 : i32, i32
  }
  func.func @transform_8(%arg0: i32, %arg1: i32) -> (i32, i32) {
    %c0_i32 = arith.constant 0 : i32
    %c0_i32_0 = arith.constant 0 : i32
    %c0_i32_1 = arith.constant 0 : i32
    return %c0_i32, %c0_i32_0 : i32, i32
  }
  func.func @transform_9(%arg0: i32, %arg1: i32) -> (i32, i32) {
    %c0_i32 = arith.constant 0 : i32
    %c0_i32_0 = arith.constant 0 : i32
    %c0_i32_1 = arith.constant 0 : i32
    return %c0_i32, %c0_i32_0 : i32, i32
  }
  func.func @transform_10(%arg0: i32, %arg1: i32) -> (i32, i32) {
    %c0_i32 = arith.constant 0 : i32
    %c0_i32_0 = arith.constant 0 : i32
    %c0_i32_1 = arith.constant 0 : i32
    return %c0_i32, %c0_i32_0 : i32, i32
  }
  func.func @transform_11(%arg0: i32, %arg1: i32) -> (i32, i32) {
    %c2_i32 = arith.constant 2 : i32
    %0 = arith.cmpi eq, %arg0, %c2_i32 : i32
    %c0_i32 = arith.constant 0 : i32
    %1 = arith.select %0, %arg1, %c0_i32 : i32
    %c0_i32_0 = arith.constant 0 : i32
    %c0_i32_1 = arith.constant 0 : i32
    return %1, %c0_i32_0 : i32, i32
  }
}

</mosaic_0001>

<bundles_post_ra>
// kernel: tpu_custom_call.1
= control target key start
LH: loop header
LB: loop body
LE: loop exit
PB: predicated region body
PF: predicated region fallthrough
CT: control target
= control target key end

     0   :  { %s2693_s19 = smov 0   ;;  %s2695_s20 = smov 0   ;;  %s3892_s0 = inlined_call_operand.vmem [shape: f32[200,48], index: 0, kind: input, shape index: {}]   ;;  %s3893_s1 = inlined_call_operand.vmem [shape: f32[48,64], index: 1, kind: input, shape index: {}]   ;;  %s3894_s2 = inlined_call_operand.vmem [shape: f32[1,64], index: 2, kind: input, shape index: {}]   ;;  %s3895_s3 = inlined_call_operand.vmem [shape: f32[1,64], index: 3, kind: input, shape index: {}]   ;;  %s3896_s4 = inlined_call_operand.vmem [shape: f32[1,64], index: 4, kind: input, shape index: {}]   ;;  %s3897_s5 = inlined_call_operand.vmem [shape: f32[64,16], index: 5, kind: input, shape index: {}]   ;;  %s3898_s6 = inlined_call_operand.vmem [shape: f32[1,16], index: 6, kind: input, shape index: {}]   ;;  %s3899_s7 = inlined_call_operand.vmem [shape: f32[1,16], index: 7, kind: input, shape index: {}]   ;;  %s3900_s8 = inlined_call_operand.vmem [shape: f32[1,16], index: 8, kind: input, shape index: {}]   ;;  %s3901_s9 = inlined_call_operand.vmem [shape: f32[16,1], index: 9, kind: input, shape index: {}]   ;;  %s3902_s10 = inlined_call_operand.<no memory space> [shape: f32[1,1], index: 10, kind: input, shape index: {}]   ;;  %s3903_s11 = inlined_call_operand.vmem [shape: f32[200,1], index: 11, kind: output, shape index: {}]  }
   0x1   :  { %16 = sst [smem:[#allocation12]] %s3902_s10  ;;  %s2697_s21 = smov 0  }
   0x2 LB: > { %s34_s10 = sadd.s32 1, %s2614_s20  ;;  %p2106_p0 = scmp.ge.s32.totalorder %s2618_s21, 1  ;;  %s2618_s21 = sphi %s2697_s21, %s22_s21   ;;  %s2614_s20 = sphi %s2695_s20, %s3905_s20   ;;  %s2610_s19 = sphi %s2693_s19, %s3904_s19  }
   0x3   : > { %p36_p1 = scmp.ge.s32.totalorder %s34_s10, 3  ;;  %p363_p2 = scmp.lt.s32.totalorder %s2618_s21, 4 }
   0x5   : > { %s3907_s10 = smov (%p36_p1, %s34_s10), 0  ;;  %p364_p3 = pnand %p2106_p0, %p363_p2 }
   0x6   : > { %p440_p4 = scmp.eq.s32.totalorder (!%p364_p3), %s2610_s19, 0 }
   0x7   : > { %367 = sbr.rel (%p364_p3) target bundleno = 1503 (0x5df), region = 64 }
   0xc   : > { %v427_v0 = vlaneseq  ;;  %v2620_v3 = vmov 0.0   ;;  %vm446_vm1 = vcmask (%p440_p4), 516096   ;;  %vm449_vm2 = vcmask (%p440_p4), 122880  }
   0xd   : > { %v2621_v5 = vmov (%p440_p4), 0.0  }
   0xe   : > { %v428_v1 = vand.u32 127, %v427_v0  ;;  %447 = vst.msk [vmem:[#allocation4] sm:$0x1] (%p440_p4), %vm446_vm1, %v2621_v5  ;;  %448 = vst.msk [vmem:[#allocation5] sm:$0x1] (%p440_p4), %vm446_vm1, %v2621_v5 }
   0xf   : > { %445 = sbr.rel (!%p440_p4) target bundleno = 20 (0x14), region = 68  ;;  %450 = vst.msk [vmem:[#allocation6] sm:$0x1] (%p440_p4), %vm449_vm2, %v2621_v5  ;;  %451 = vst.msk [vmem:[#allocation7] sm:$0x1] (%p440_p4), %vm449_vm2, %v2621_v5 }
  0x10   : > { %v429_v2 = vadd.s32 128, %v428_v1 }
  0x12   : > { %vm435_vm0 = vcmp.lt.s32.totalorder %v429_v2, 200 }
  0x13   : > { %v2714_v4 = vsel %vm435_vm0, 1.0, %v2620_v3 }
  0x14 PF: > { %p2109_p5 = scmp.ne.s32.totalorder %s2610_s19, 0 }
  0x16   : > { %454 = sbr.rel (%p2109_p5) target bundleno = 594 (0x252), region = 72 }
  0x1b   : > { %v485_v6 = vld [vmem:[%s3893_s1 + $0x28] sm:$0xff]  ;;  %v2622_v7 = vmov 0.0   ;;  %v484_v8 = vld [vmem:[%s3893_s1 + $0x20] sm:$0xff]  ;;  %vm2623_vm3 = vmmov 0   ;;  %v483_v9 = vld [vmem:[%s3893_s1 + $0x18] sm:$0xff]  ;;  %vm493_vm4 = vcmask 392192  }
  0x1c   : > { %2297 = vmatprep.subr.mxu0 %v2622_v7  ;;  %2309 = vmatprep.mubr.msk.f32.mxu0 %vm2623_vm3, %v2622_v7  ;;  %v482_v10 = vld [vmem:[%s3893_s1 + $0x10] sm:$0xff]  ;;  %v481_v11 = vld [vmem:[%s3893_s1 + $0x8] sm:$0xff]  ;;  %v480_v12 = vld [vmem:[%s3893_s1] sm:$0xff]  ;;  %vm787_vm5 = vcmask 588800   ;;  %vm760_vm6 = vcmask 523264   ;;  %vm862_vm7 = vcmask 516096  }
  0x1d   : > { %2298 = vmatpush3.msra.mxu0 %v485_v6  ;;  %791 = vmatprep.subr.mxu1 %v2622_v7  ;;  %v455_v13 = vld [vmem:[%s3892_s0] sm:$0xff]  ;;  %v456_v14 = vld [vmem:[%s3892_s0 + $0x8] sm:$0xff]  ;;  %v457_v15 = vld [vmem:[%s3892_s0 + $0x10] sm:$0xff] }
  0x1e   : > { %2299 = vmatprep.subr.mxu0 %v2622_v7  ;;  %v458_v16 = vld [vmem:[%s3892_s0 + $0x18] sm:$0xff]  ;;  %v459_v17 = vld [vmem:[%s3892_s0 + $0x20] sm:$0xff]  ;;  %v460_v18 = vld [vmem:[%s3892_s0 + $0x28] sm:$0xff]  ;;  %2136 = vmatprep.mubr.msk.f32.mxu1 %vm787_vm5, %v2714_v4 }
  0x1f   : > { %2300 = vmatpush3.msra.mxu0 %v484_v8  ;;  %v461_v19 = vld [vmem:[%s3892_s0 + $0x30] sm:$0xff]  ;;  %v462_v20 = vld [vmem:[%s3892_s0 + $0x38] sm:$0xff]  ;;  %v463_v21 = vld [vmem:[%s3892_s0 + $0x40] sm:$0xff] }
  0x20   : > { %2301 = vmatprep.subr.mxu0 %v2622_v7  ;;  %v464_v22 = vld [vmem:[%s3892_s0 + $0x48] sm:$0xff]  ;;  %v465_v23 = vld [vmem:[%s3892_s0 + $0x50] sm:$0xff]  ;;  %v466_v24 = vld [vmem:[%s3892_s0 + $0x58] sm:$0xff] }
  0x21   : > { %2302 = vmatpush3.msra.mxu0 %v483_v9  ;;  %v467_v25 = vld [vmem:[%s3892_s0 + $0x60] sm:$0xff]  ;;  %v468_v26 = vld [vmem:[%s3892_s0 + $0x68] sm:$0xff]  ;;  %v469_v27 = vld [vmem:[%s3892_s0 + $0x70] sm:$0xff] }
  0x22   : > { %2303 = vmatprep.subr.mxu0 %v2622_v7  ;;  %v470_v28 = vld [vmem:[%s3892_s0 + $0x78] sm:$0xff]  ;;  %v471_v29 = vld [vmem:[%s3892_s0 + $0x80] sm:$0xff]  ;;  %v472_v30 = vld [vmem:[%s3892_s0 + $0x88] sm:$0xff] }
  0x23   : > { %2304 = vmatpush3.msra.mxu0 %v482_v10  ;;  %v473_v31 = vld [vmem:[%s3892_s0 + $0x90] sm:$0xff]  ;;  %v474_v32 = vld [vmem:[%s3892_s0 + $0x98] sm:$0xff]  ;;  %v475_v33 = vld [vmem:[%s3892_s0 + $0xa0] sm:$0xff] }
  0x24   : > { %2305 = vmatprep.subr.mxu0 %v2622_v7  ;;  %v476_v34 = vld [vmem:[%s3892_s0 + $0xa8] sm:$0xff]  ;;  %v477_v35 = vld [vmem:[%s3892_s0 + $0xb0] sm:$0xff]  ;;  %v478_v36 = vld [vmem:[%s3892_s0 + $0xb8] sm:$0xff] }
  0x25   : > { %2306 = vmatpush3.msra.mxu0 %v481_v11  ;;  %v479_v37 = vld [vmem:[%s3892_s0 + $0xc0] sm:$0xff] }
  0x26   : > { %2307 = vmatprep.subr.mxu0 %v2622_v7  ;;  %v2897_v38 = vld [vmem:[%s3894_s2] ss:$0 sm:$0xff] }
  0x27   : > { %2308 = vmatpush3.msra.mxu0 %v480_v12 }
  0x28   : > { %2310 = vmatmul.mubr.msk.f32.vlgmr.msra.gmra.mxu0 %vm493_vm4, %v455_v13 }
  0x29   : > { %2312 = vmatprep.mubr.msk.f32.mxu0 %vm2623_vm3, %v2622_v7 }
  0x2c   : > { %2313 = vmatmul.mubr.msk.f32.gmra.mxu0 %vm493_vm4, %v456_v14 }
  0x2d   : > { %2315 = vmatprep.mubr.msk.f32.mxu0 %vm2623_vm3, %v2622_v7 }
  0x30   : > { %2316 = vmatmul.mubr.msk.f32.gmra.mxu0 %vm493_vm4, %v457_v15 }
  0x31   : > { %2318 = vmatprep.mubr.msk.f32.mxu0 %vm2623_vm3, %v2622_v7 }
  0x34   : > { %2319 = vmatmul.mubr.msk.f32.gmra.mxu0 %vm493_vm4, %v458_v16 }
  0x35   : > { %2321 = vmatprep.mubr.msk.f32.mxu0 %vm2623_vm3, %v2622_v7 }
  0x38   : > { %2322 = vmatmul.mubr.msk.f32.gmra.mxu0 %vm493_vm4, %v459_v17 }
  0x39   : > { %2324 = vmatprep.mubr.msk.f32.mxu0 %vm2623_vm3, %v2622_v7 }
  0x3c   : > { %2325 = vmatmul.mubr.msk.f32.gmra.mxu0 %vm493_vm4, %v460_v18 }
  0x3d   : > { %2327 = vmatprep.mubr.msk.f32.mxu0 %vm2623_vm3, %v2622_v7 }
  0x40   : > { %2328 = vmatmul.mubr.msk.f32.gmra.mxu0 %vm493_vm4, %v461_v19 }
  0x41   : > { %2330 = vmatprep.mubr.msk.f32.mxu0 %vm2623_vm3, %v2622_v7 }
  0x44   : > { %2331 = vmatmul.mubr.msk.f32.gmra.mxu0 %vm493_vm4, %v462_v20 }
  0x45   : > { %2333 = vmatprep.mubr.msk.f32.mxu0 %vm2623_vm3, %v2622_v7 }
  0x48   : > { %2334 = vmatmul.mubr.msk.f32.gmra.mxu0 %vm493_vm4, %v463_v21 }
  0x49   : > { %2336 = vmatprep.mubr.msk.f32.mxu0 %vm2623_vm3, %v2622_v7 }
  0x4c   : > { %2337 = vmatmul.mubr.msk.f32.gmra.mxu0 %vm493_vm4, %v464_v22 }
  0x4d   : > { %2339 = vmatprep.mubr.msk.f32.mxu0 %vm2623_vm3, %v2622_v7 }
  0x50   : > { %2340 = vmatmul.mubr.msk.f32.gmra.mxu0 %vm493_vm4, %v465_v23 }
  0x51   : > { %2342 = vmatprep.mubr.msk.f32.mxu0 %vm2623_vm3, %v2622_v7 }
  0x54   : > { %2343 = vmatmul.mubr.msk.f32.gmra.mxu0 %vm493_vm4, %v466_v24 }
  0x55   : > { %2345 = vmatprep.mubr.msk.f32.mxu0 %vm2623_vm3, %v2622_v7 }
  0x58   : > { %2346 = vmatmul.mubr.msk.f32.gmra.mxu0 %vm493_vm4, %v467_v25 }
  0x59   : > { %2348 = vmatprep.mubr.msk.f32.mxu0 %vm2623_vm3, %v2622_v7 }
  0x5c   : > { %2349 = vmatmul.mubr.msk.f32.gmra.mxu0 %vm493_vm4, %v468_v26 }
  0x5d   : > { %2351 = vmatprep.mubr.msk.f32.mxu0 %vm2623_vm3, %v2622_v7 }
  0x60   : > { %2352 = vmatmul.mubr.msk.f32.gmra.mxu0 %vm493_vm4, %v469_v27 }
  0x61   : > { %2354 = vmatprep.mubr.msk.f32.mxu0 %vm2623_vm3, %v2622_v7 }
  0x64   : > { %2355 = vmatmul.mubr.msk.f32.gmra.mxu0 %vm493_vm4, %v470_v28 }
  0x65   : > { %2357 = vmatprep.mubr.msk.f32.mxu0 %vm2623_vm3, %v2622_v7 }
  0x68   : > { %2358 = vmatmul.mubr.msk.f32.gmra.mxu0 %vm493_vm4, %v471_v29 }
  0x69   : > { %2360 = vmatprep.mubr.msk.f32.mxu0 %vm2623_vm3, %v2622_v7 }
  0x6c   : > { %2361 = vmatmul.mubr.msk.f32.gmra.mxu0 %vm493_vm4, %v472_v30 }
  0x6d   : > { %2363 = vmatprep.mubr.msk.f32.mxu0 %vm2623_vm3, %v2622_v7 }
  0x70   : > { %2364 = vmatmul.mubr.msk.f32.gmra.mxu0 %vm493_vm4, %v473_v31 }
  0x71   : > { %2366 = vmatprep.mubr.msk.f32.mxu0 %vm2623_vm3, %v2622_v7 }
  0x74   : > { %2367 = vmatmul.mubr.msk.f32.gmra.mxu0 %vm493_vm4, %v474_v32 }
  0x75   : > { %2369 = vmatprep.mubr.msk.f32.mxu0 %vm2623_vm3, %v2622_v7 }
  0x78   : > { %2370 = vmatmul.mubr.msk.f32.gmra.mxu0 %vm493_vm4, %v475_v33 }
  0x79   : > { %2372 = vmatprep.mubr.msk.f32.mxu0 %vm2623_vm3, %v2622_v7 }
  0x7c   : > { %2373 = vmatmul.mubr.msk.f32.gmra.mxu0 %vm493_vm4, %v476_v34 }
  0x7d   : > { %2375 = vmatprep.mubr.msk.f32.mxu0 %vm2623_vm3, %v2622_v7 }
  0x80   : > { %2376 = vmatmul.mubr.msk.f32.gmra.mxu0 %vm493_vm4, %v477_v35 }
  0x81   : > { %2378 = vmatprep.mubr.msk.f32.mxu0 %vm2623_vm3, %v2622_v7 }
  0x84   : > { %2379 = vmatmul.mubr.msk.f32.gmra.mxu0 %vm493_vm4, %v478_v36 }
  0x85   : > { %2381 = vmatprep.mubr.msk.f32.mxu0 %vm2623_vm3, %v2622_v7 }
  0x88   : > { %2382 = vmatmul.mubr.msk.f32.gmra.mxu0 %vm493_vm4, %v479_v37 }
  0xe8   : > { %v635_v39 = vpop.f32.mrf.mxu0 }
  0xe9   : > { %v2900_v40 = vadd.f32 %v2897_v38, %v635_v39 }
  0xea   : > { %v2311_v41 = vpop.f32.mrf.mxu0 }
  0xeb   : > { %761 = vst.msk [vmem:[#allocation2] sm:$0xff] %vm760_vm6, %v2900_v40 }
  0xec   : > { %v640_v42 = vpop.f32.mrf.mxu0 }
  0xed   : > { %v2905_v43 = vadd.f32 %v2897_v38, %v640_v42 }
  0xee   : > { %v2314_v44 = vpop.f32.mrf.mxu0 }
  0xef   : > { %762 = vst.msk [vmem:[#allocation2 + $0x8] sm:$0xff] %vm760_vm6, %v2905_v43 }
  0xf0   : > { %v645_v45 = vpop.f32.mrf.mxu0 }
  0xf1   : > { %v2910_v46 = vadd.f32 %v2897_v38, %v645_v45 }
  0xf2   : > { %v2317_v47 = vpop.f32.mrf.mxu0 }
  0xf3   : > { %763 = vst.msk [vmem:[#allocation2 + $0x10] sm:$0xff] %vm760_vm6, %v2910_v46 }
  0xf4   : > { %v650_v48 = vpop.f32.mrf.mxu0 }
  0xf5   : > { %v2915_v49 = vadd.f32 %v2897_v38, %v650_v48 }
  0xf6   : > { %v2320_v50 = vpop.f32.mrf.mxu0 }
  0xf7   : > { %764 = vst.msk [vmem:[#allocation2 + $0x18] sm:$0xff] %vm760_vm6, %v2915_v49 }
  0xf8   : > { %v655_v51 = vpop.f32.mrf.mxu0 }
  0xf9   : > { %v2920_v52 = vadd.f32 %v2897_v38, %v655_v51 }
  0xfa   : > { %v2323_v53 = vpop.f32.mrf.mxu0 }
  0xfb   : > { %765 = vst.msk [vmem:[#allocation2 + $0x20] sm:$0xff] %vm760_vm6, %v2920_v52 }
  0xfc   : > { %v660_v54 = vpop.f32.mrf.mxu0 }
  0xfd   : > { %v2925_v55 = vadd.f32 %v2897_v38, %v660_v54 }
  0xfe   : > { %v2326_v56 = vpop.f32.mrf.mxu0 }
  0xff   : > { %766 = vst.msk [vmem:[#allocation2 + $0x28] sm:$0xff] %vm760_vm6, %v2925_v55 }
 0x100   : > { %v665_v57 = vpop.f32.mrf.mxu0 }
 0x101   : > { %v2930_v58 = vadd.f32 %v2897_v38, %v665_v57 }
 0x102   : > { %v2329_v59 = vpop.f32.mrf.mxu0 }
 0x103   : > { %767 = vst.msk [vmem:[#allocation2 + $0x30] sm:$0xff] %vm760_vm6, %v2930_v58 }
 0x104   : > { %v670_v60 = vpop.f32.mrf.mxu0 }
 0x105   : > { %v2935_v61 = vadd.f32 %v2897_v38, %v670_v60  ;;  %v2624_v60 = vmov 1.0  }
 0x106   : > { %v2332_v62 = vpop.f32.mrf.mxu0 }
 0x107   : > { %768 = vst.msk [vmem:[#allocation2 + $0x38] sm:$0xff] %vm760_vm6, %v2935_v61 }
 0x108   : > { %v675_v63 = vpop.f32.mrf.mxu0 }
 0x109   : > { %v2940_v0 = vadd.f32 %v2897_v38, %v675_v63 }
 0x10a   : > { %v2335_v1 = vpop.f32.mrf.mxu0 }
 0x10b   : > { %769 = vst.msk [vmem:[#allocation2 + $0x40] sm:$0xff] %vm760_vm6, %v2940_v0 }
 0x10c   : > { %v680_v2 = vpop.f32.mrf.mxu0 }
 0x10d   : > { %v2945_v3 = vadd.f32 %v2897_v38, %v680_v2 }
 0x10e   : > { %v2338_v5 = vpop.f32.mrf.mxu0 }
 0x10f   : > { %770 = vst.msk [vmem:[#allocation2 + $0x48] sm:$0xff] %vm760_vm6, %v2945_v3 }
 0x110   : > { %v685_v6 = vpop.f32.mrf.mxu0 }
 0x111   : > { %v2950_v8 = vadd.f32 %v2897_v38, %v685_v6  ;;  %v874_v6 = vmul.f32 %v2945_v3, %v2945_v3 }
 0x112   : > { %v2341_v9 = vpop.f32.mrf.mxu0 }
 0x113   : > { %771 = vst.msk [vmem:[#allocation2 + $0x50] sm:$0xff] %vm760_vm6, %v2950_v8  ;;  %v875_v5 = vmul.f32 %v2950_v8, %v2950_v8  ;;  %v873_v9 = vmul.f32 %v2940_v0, %v2940_v0 }
 0x114   : > { %v690_v10 = vpop.f32.mrf.mxu0 }
 0x115   : > { %v2955_v11 = vadd.f32 %v2897_v38, %v690_v10  ;;  %v872_v10 = vmul.f32 %v2935_v61, %v2935_v61 }
 0x116   : > { %v2344_v12 = vpop.f32.mrf.mxu0 }
 0x117   : > { %772 = vst.msk [vmem:[#allocation2 + $0x58] sm:$0xff] %vm760_vm6, %v2955_v11  ;;  %v876_v2 = vmul.f32 %v2955_v11, %v2955_v11 }
 0x118   : > { %v695_v13 = vpop.f32.mrf.mxu0 }
 0x119   : > { %v2960_v14 = vadd.f32 %v2897_v38, %v695_v13 }
 0x11a   : > { %v2347_v15 = vpop.f32.mrf.mxu0 }
 0x11b   : > { %773 = vst.msk [vmem:[#allocation2 + $0x60] sm:$0xff] %vm760_vm6, %v2960_v14  ;;  %v877_v1 = vmul.f32 %v2960_v14, %v2960_v14 }
 0x11c   : > { %v700_v16 = vpop.f32.mrf.mxu0 }
 0x11d   : > { %v2965_v17 = vadd.f32 %v2897_v38, %v700_v16  ;;  %v786_v16 = vld [vmem:[#allocation4] sm:$0x1] }
 0x11e   : > { %v2350_v18 = vpop.f32.mrf.mxu0 }
 0x11f   : > { %774 = vst.msk [vmem:[#allocation2 + $0x68] sm:$0xff] %vm760_vm6, %v2965_v17  ;;  %v878_v63 = vmul.f32 %v2965_v17, %v2965_v17 }
 0x120   : > { %v705_v19 = vpop.f32.mrf.mxu0 }
 0x121   : > { %v2970_v20 = vadd.f32 %v2897_v38, %v705_v19 }
 0x122   : > { %v2353_v21 = vpop.f32.mrf.mxu0 }
 0x123   : > { %775 = vst.msk [vmem:[#allocation2 + $0x70] sm:$0xff] %vm760_vm6, %v2970_v20  ;;  %v879_v62 = vmul.f32 %v2970_v20, %v2970_v20 }
 0x124   : > { %v710_v22 = vpop.f32.mrf.mxu0 }
 0x125   : > { %v2975_v23 = vadd.f32 %v2897_v38, %v710_v22 }
 0x126   : > { %v2356_v24 = vpop.f32.mrf.mxu0 }
 0x127   : > { %776 = vst.msk [vmem:[#allocation2 + $0x78] sm:$0xff] %vm760_vm6, %v2975_v23  ;;  %792 = vmatpush1.msra.mxu1 %v2975_v23 }
 0x128   : > { %v715_v25 = vpop.f32.mrf.mxu0  ;;  %793 = vmatprep.subr.mxu1 %v2622_v7 }
 0x129   : > { %v2982_v26 = vadd.f32 %v2897_v38, %v715_v25  ;;  %794 = vmatpush1.msra.mxu1 %v2970_v20  ;;  %v864_v20 = vld [vmem:[#allocation5] sm:$0x1] }
 0x12a   : > { %v2359_v27 = vpop.f32.mrf.mxu0  ;;  %795 = vmatprep.subr.mxu1 %v2622_v7 }
 0x12b   : > { %777 = vst.msk [vmem:[#allocation2 + $0x80] sm:$0xff] %vm760_vm6, %v2982_v26  ;;  %796 = vmatpush1.msra.mxu1 %v2965_v17  ;;  %v881_v15 = vmul.f32 %v2982_v26, %v2982_v26 }
 0x12c   : > { %v720_v28 = vpop.f32.mrf.mxu0  ;;  %797 = vmatprep.subr.mxu1 %v2622_v7 }
 0x12d   : > { %v2991_v29 = vadd.f32 %v2897_v38, %v720_v28  ;;  %798 = vmatpush1.msra.mxu1 %v2960_v14 }
 0x12e   : > { %v2362_v30 = vpop.f32.mrf.mxu0  ;;  %799 = vmatprep.subr.mxu1 %v2622_v7 }
 0x12f   : > { %778 = vst.msk [vmem:[#allocation2 + $0x88] sm:$0xff] %vm760_vm6, %v2991_v29  ;;  %800 = vmatpush1.msra.mxu1 %v2955_v11  ;;  %v882_v14 = vmul.f32 %v2991_v29, %v2991_v29 }
 0x130   : > { %v725_v31 = vpop.f32.mrf.mxu0  ;;  %801 = vmatprep.subr.mxu1 %v2622_v7 }
 0x131   : > { %v3000_v32 = vadd.f32 %v2897_v38, %v725_v31  ;;  %802 = vmatpush1.msra.mxu1 %v2950_v8  ;;  %v871_v8 = vmul.f32 %v2930_v58, %v2930_v58 }
 0x132   : > { %v2365_v33 = vpop.f32.mrf.mxu0  ;;  %803 = vmatprep.subr.mxu1 %v2622_v7 }
 0x133   : > { %779 = vst.msk [vmem:[#allocation2 + $0x90] sm:$0xff] %vm760_vm6, %v3000_v32  ;;  %804 = vmatpush1.msra.mxu1 %v2945_v3  ;;  %v870_v3 = vmul.f32 %v2925_v55, %v2925_v55  ;;  %v883_v13 = vmul.f32 %v3000_v32, %v3000_v32 }
 0x134   : > { %v730_v34 = vpop.f32.mrf.mxu0  ;;  %805 = vmatprep.subr.mxu1 %v2622_v7 }
 0x135   : > { %v3009_v35 = vadd.f32 %v2897_v38, %v730_v34  ;;  %806 = vmatpush1.msra.mxu1 %v2940_v0  ;;  %v869_v0 = vmul.f32 %v2920_v52, %v2920_v52 }
 0x136   : > { %v2368_v36 = vpop.f32.mrf.mxu0  ;;  %807 = vmatprep.subr.mxu1 %v2622_v7 }
 0x137   : > { %780 = vst.msk [vmem:[#allocation2 + $0x98] sm:$0xff] %vm760_vm6, %v3009_v35  ;;  %808 = vmatpush1.msra.mxu1 %v2935_v61  ;;  %v868_v61 = vmul.f32 %v2915_v49, %v2915_v49  ;;  %v884_v12 = vmul.f32 %v3009_v35, %v3009_v35 }
 0x138   : > { %v735_v37 = vpop.f32.mrf.mxu0  ;;  %809 = vmatprep.subr.mxu1 %v2622_v7 }
 0x139   : > { %v3018_v39 = vadd.f32 %v2897_v38, %v735_v37  ;;  %810 = vmatpush1.msra.mxu1 %v2930_v58  ;;  %v867_v58 = vmul.f32 %v2910_v46, %v2910_v46 }
 0x13a   : > { %v2371_v41 = vpop.f32.mrf.mxu0  ;;  %811 = vmatprep.subr.mxu1 %v2622_v7 }
 0x13b   : > { %781 = vst.msk [vmem:[#allocation2 + $0xa0] sm:$0xff] %vm760_vm6, %v3018_v39  ;;  %812 = vmatpush1.msra.mxu1 %v2925_v55  ;;  %v866_v55 = vmul.f32 %v2905_v43, %v2905_v43  ;;  %v885_v11 = vmul.f32 %v3018_v39, %v3018_v39 }
 0x13c   : > { %v740_v42 = vpop.f32.mrf.mxu0  ;;  %813 = vmatprep.subr.mxu1 %v2622_v7 }
 0x13d   : > { %v3027_v44 = vadd.f32 %v2897_v38, %v740_v42  ;;  %814 = vmatpush1.msra.mxu1 %v2920_v52  ;;  %v865_v52 = vmul.f32 %v2900_v40, %v2900_v40 }
 0x13e   : > { %v2374_v45 = vpop.f32.mrf.mxu0  ;;  %815 = vmatprep.subr.mxu1 %v2622_v7 }
 0x13f   : > { %782 = vst.msk [vmem:[#allocation2 + $0xa8] sm:$0xff] %vm760_vm6, %v3027_v44  ;;  %816 = vmatpush1.msra.mxu1 %v2915_v49 }
 0x140   : > { %v745_v47 = vpop.f32.mrf.mxu0  ;;  %817 = vmatprep.subr.mxu1 %v2622_v7 }
 0x141   : > { %v3036_v48 = vadd.f32 %v2897_v38, %v745_v47  ;;  %818 = vmatpush1.msra.mxu1 %v2910_v46 }
 0x142   : > { %v2377_v50 = vpop.f32.mrf.mxu0  ;;  %819 = vmatprep.subr.mxu1 %v2622_v7 }
 0x143   : > { %783 = vst.msk [vmem:[#allocation2 + $0xb0] sm:$0xff] %vm760_vm6, %v3036_v48  ;;  %820 = vmatpush1.msra.mxu1 %v2905_v43  ;;  %v887_v43 = vmul.f32 %v3036_v48, %v3036_v48 }
 0x144   : > { %v750_v51 = vpop.f32.mrf.mxu0  ;;  %821 = vmatprep.subr.mxu1 %v2622_v7 }
 0x145   : > { %v3045_v53 = vadd.f32 %v2897_v38, %v750_v51  ;;  %822 = vmatpush1.msra.mxu1 %v2900_v40  ;;  %v886_v40 = vmul.f32 %v3027_v44, %v3027_v44 }
 0x146   : > { %v2380_v54 = vpop.f32.mrf.mxu0  ;;  %837 = vmatprep.subr.mxu1 %v2622_v7 }
 0x147   : > { %784 = vst.msk [vmem:[#allocation2 + $0xb8] sm:$0xff] %vm760_vm6, %v3045_v53  ;;  %v888_v46 = vmul.f32 %v3045_v53, %v3045_v53 }
 0x148   : > { %v755_v56 = vpop.f32.mrf.mxu0 }
 0x149   : > { %v3052_v57 = vadd.f32 %v2897_v38, %v755_v56  ;;  %v880_v38 = vmul.f32 %v2975_v23, %v2975_v23 }
 0x14a   : > { %v2383_v59 = vpop.f32.mrf.mxu0 }
 0x14b   : > { %785 = vst.msk [vmem:[#allocation2 + $0xc0] sm:$0xff] %vm760_vm6, %v3052_v57  ;;  %838 = vmatpush2.msra.mxu1 %v3052_v57  ;;  %v889_v49 = vmul.f32 %v3052_v57, %v3052_v57 }
 0x14c   : > { %839 = vmatprep.subr.mxu1 %v2622_v7 }
 0x14d   : > { %840 = vmatpush2.msra.mxu1 %v3045_v53 }
 0x14e   : > { %841 = vmatprep.subr.mxu1 %v2622_v7 }
 0x14f   : > { %842 = vmatpush2.msra.mxu1 %v3036_v48 }
 0x150   : > { %843 = vmatprep.subr.mxu1 %v2622_v7 }
 0x151   : > { %844 = vmatpush2.msra.mxu1 %v3027_v44 }
 0x152   : > { %845 = vmatprep.subr.mxu1 %v2622_v7 }
 0x153   : > { %846 = vmatpush2.msra.mxu1 %v3018_v39 }
 0x154   : > { %847 = vmatprep.subr.mxu1 %v2622_v7 }
 0x155   : > { %848 = vmatpush2.msra.mxu1 %v3009_v35 }
 0x156   : > { %849 = vmatprep.subr.mxu1 %v2622_v7 }
 0x157   : > { %850 = vmatpush2.msra.mxu1 %v3000_v32 }
 0x158   : > { %851 = vmatprep.subr.mxu1 %v2622_v7 }
 0x159   : > { %852 = vmatpush2.msra.mxu1 %v2991_v29 }
 0x15a   : > { %853 = vmatprep.subr.mxu1 %v2622_v7 }
 0x15b   : > { %854 = vmatpush2.msra.mxu1 %v2982_v26 }
 0x15c   : > { %856 = vmatmul.mubr.f32.vlgmr.msra.gmra.mxu1 %v2624_v60  ;;  %890 = vmatprep.subr.mxu1 %v2622_v7 }
 0x15d   : > { %891 = vmatpush1.msra.mxu1 %v880_v38  ;;  %2137 = vmatprep.mubr.msk.f32.mxu1 %vm787_vm5, %v2714_v4 }
 0x15e   : > { %892 = vmatprep.subr.mxu1 %v2622_v7 }
 0x15f   : > { %893 = vmatpush1.msra.mxu1 %v879_v62 }
 0x160   : > { %894 = vmatprep.subr.mxu1 %v2622_v7 }
 0x161   : > { %895 = vmatpush1.msra.mxu1 %v878_v63 }
 0x162   : > { %896 = vmatprep.subr.mxu1 %v2622_v7 }
 0x163   : > { %897 = vmatpush1.msra.mxu1 %v877_v1 }
 0x164   : > { %898 = vmatprep.subr.mxu1 %v2622_v7 }
 0x165   : > { %899 = vmatpush1.msra.mxu1 %v876_v2 }
 0x166   : > { %900 = vmatprep.subr.mxu1 %v2622_v7 }
 0x167   : > { %901 = vmatpush1.msra.mxu1 %v875_v5 }
 0x168   : > { %902 = vmatprep.subr.mxu1 %v2622_v7 }
 0x169   : > { %903 = vmatpush1.msra.mxu1 %v874_v6 }
 0x16a   : > { %904 = vmatprep.subr.mxu1 %v2622_v7 }
 0x16b   : > { %905 = vmatpush1.msra.mxu1 %v873_v9 }
 0x16c   : > { %906 = vmatprep.subr.mxu1 %v2622_v7 }
 0x16d   : > { %907 = vmatpush1.msra.mxu1 %v872_v10 }
 0x16e   : > { %908 = vmatprep.subr.mxu1 %v2622_v7 }
 0x16f   : > { %909 = vmatpush1.msra.mxu1 %v871_v8 }
 0x170   : > { %910 = vmatprep.subr.mxu1 %v2622_v7 }
 0x171   : > { %911 = vmatpush1.msra.mxu1 %v870_v3 }
 0x172   : > { %912 = vmatprep.subr.mxu1 %v2622_v7 }
 0x173   : > { %913 = vmatpush1.msra.mxu1 %v869_v0 }
 0x174   : > { %914 = vmatprep.subr.mxu1 %v2622_v7 }
 0x175   : > { %915 = vmatpush1.msra.mxu1 %v868_v61 }
 0x176   : > { %916 = vmatprep.subr.mxu1 %v2622_v7 }
 0x177   : > { %917 = vmatpush1.msra.mxu1 %v867_v58 }
 0x178   : > { %918 = vmatprep.subr.mxu1 %v2622_v7 }
 0x179   : > { %919 = vmatpush1.msra.mxu1 %v866_v55 }
 0x17a   : > { %920 = vmatprep.subr.mxu1 %v2622_v7 }
 0x17b   : > { %921 = vmatpush1.msra.mxu1 %v865_v52 }
 0x17c   : > { %936 = vmatprep.subr.mxu1 %v2622_v7 }
 0x17d   : > { %937 = vmatpush2.msra.mxu1 %v889_v49 }
 0x17e   : > { %938 = vmatprep.subr.mxu1 %v2622_v7 }
 0x17f   : > { %939 = vmatpush2.msra.mxu1 %v888_v46 }
 0x180   : > { %940 = vmatprep.subr.mxu1 %v2622_v7 }
 0x181   : > { %941 = vmatpush2.msra.mxu1 %v887_v43 }
 0x182   : > { %942 = vmatprep.subr.mxu1 %v2622_v7 }
 0x183   : > { %943 = vmatpush2.msra.mxu1 %v886_v40 }
 0x184   : > { %944 = vmatprep.subr.mxu1 %v2622_v7 }
 0x185   : > { %945 = vmatpush2.msra.mxu1 %v885_v11 }
 0x186   : > { %946 = vmatprep.subr.mxu1 %v2622_v7 }
 0x187   : > { %947 = vmatpush2.msra.mxu1 %v884_v12 }
 0x188   : > { %948 = vmatprep.subr.mxu1 %v2622_v7 }
 0x189   : > { %949 = vmatpush2.msra.mxu1 %v883_v13 }
 0x18a   : > { %950 = vmatprep.subr.mxu1 %v2622_v7 }
 0x18b   : > { %951 = vmatpush2.msra.mxu1 %v882_v14 }
 0x18c   : > { %952 = vmatprep.subr.mxu1 %v2622_v7 }
 0x18d   : > { %953 = vmatpush2.msra.mxu1 %v881_v15 }
 0x18e   : > { %955 = vmatmul.mubr.f32.vlgmr.msra.gmra.mxu1 %v2624_v60 }
 0x21c   : > { %v857_v17 = vpop.f32.mrf.mxu1 }
 0x21d   : > { %v861_v18 = vadd.f32 %v857_v17, %v786_v16 }
 0x21e   : > { %v859_v19 = vpop.f32.mrf.mxu1 }
 0x21f   : > { %863 = vst.msk [vmem:[#allocation4] sm:$0x1] %vm862_vm7, %v861_v18 }
 0x24e   : > { %v956_v21 = vpop.f32.mrf.mxu1 }
 0x24f   : > { %v960_v22 = vadd.f32 %v956_v21, %v864_v20 }
 0x250   : > { %v958_v23 = vpop.f32.mrf.mxu1 }
 0x251   : > { %961 = vst.msk [vmem:[#allocation5] sm:$0x1] %vm862_vm7, %v960_v22 }
 0x252 PF: > { %p962_p6 = scmp.eq.s32.totalorder %s2610_s19, 1 }
 0x253   : > { %v967_v24 = vld [vmem:[#allocation4] sm:$0x1] (%p962_p6)  ;;  %v969_v31 = vld [vmem:[%s3895_s3] sm:$0x1] (%p962_p6)  ;;  %vm981_vm8 = vcmask (%p962_p6), 516096  }
 0x254   : > { %966 = sbr.rel (!%p962_p6) target bundleno = 630 (0x276), region = 76  ;;  %v971_v25 = vmul.f32 (%p962_p6), 0.005, %v967_v24  ;;  %v970_v34 = vld [vmem:[%s3896_s4] sm:$0x1] (%p962_p6) }
 0x256   : > { %v973_v27 = vmul.f32 (%p962_p6), %v971_v25, %v971_v25 }
 0x258   : > { %v968_v7 = vld [vmem:[#allocation5] sm:$0x1] (%p962_p6) }
 0x259   : > { %v972_v26 = vmul.f32 0.005, %v968_v7 }
 0x25b   : > { %v974_v28 = vsub.f32 %v972_v26, %v973_v27 }
 0x25d   : > { %v975_v29 = vmax.f32 %v974_v28, 0.0 }
 0x25f   : > { %v976_v30 = vadd.f32 1e-05, %v975_v29 }
 0x261   : > { %2592 = vrsqrt.f32 %v976_v30 }
 0x26e   : > { %v2593_v32 = vpop.eup %2592 }
 0x26f   : > { %v978_v33 = vmul.f32 %v2593_v32, %v969_v31 }
 0x271   : > { %982 = vst.msk [vmem:[#allocation8] sm:$0x1] %vm981_vm8, %v978_v33  ;;  %v979_v35 = vmul.f32 %v978_v33, %v971_v25 }
 0x273   : > { %v980_v36 = vsub.f32 %v970_v34, %v979_v35 }
 0x275   : > { %983 = vst.msk [vmem:[#allocation9] sm:$0x1] %vm981_vm8, %v980_v36 }
 0x276 PF: > { %p2139_p7 = scmp.ne.s32.totalorder %s2610_s19, 1 }
 0x278   : > { %986 = sbr.rel (%p2139_p7) target bundleno = 1208 (0x4b8), region = 80 }
 0x27d   : > { %v1109_v37 = vld [vmem:[%s3897_s5 + $0x38] sm:$0xff]  ;;  %v2625_v39 = vmov 0.0   ;;  %v1108_v41 = vld [vmem:[%s3897_s5 + $0x30] sm:$0xff]  ;;  %vm2626_vm9 = vmmov 0   ;;  %v988_v42 = vld [vmem:[#allocation2] sm:$0xff]  ;;  %vm1117_vm10 = vcmask 523264  }
 0x27e   : > { %2384 = vmatprep.subr.mxu0 %v2625_v39  ;;  %2400 = vmatprep.mubr.msk.f32.mxu0 %vm2626_vm9, %v2625_v39  ;;  %v1107_v44 = vld [vmem:[%s3897_s5 + $0x28] sm:$0xff]  ;;  %v3174_v45 = vld [vmem:[#allocation8] ss:$0 sm:$0xff]  ;;  %v1106_v47 = vld [vmem:[%s3897_s5 + $0x20] sm:$0xff]  ;;  %vm1411_vm11 = vcmask 588800   ;;  %vm1384_vm12 = vcmask 130048  }
 0x27f   : > { %2385 = vmatpush3.msra.mxu0 %v1109_v37  ;;  %1415 = vmatprep.subr.mxu1 %v2625_v39  ;;  %v1020_v48 = vmul.f32 %v3174_v45, %v988_v42  ;;  %v3181_v50 = vld [vmem:[#allocation9] ss:$0 sm:$0xff]  ;;  %v989_v51 = vld [vmem:[#allocation2 + $0x8] sm:$0xff]  ;;  %v1105_v53 = vld [vmem:[%s3897_s5 + $0x18] sm:$0xff]  ;;  %vm1486_vm13 = vcmask 122880  }
 0x280   : > { %2386 = vmatprep.subr.mxu0 %v2625_v39  ;;  %v1104_v54 = vld [vmem:[%s3897_s5 + $0x10] sm:$0xff]  ;;  %v1021_v57 = vmul.f32 %v3174_v45, %v989_v51  ;;  %v1103_v38 = vld [vmem:[%s3897_s5 + $0x8] sm:$0xff]  ;;  %v1102_v60 = vld [vmem:[%s3897_s5] sm:$0xff]  ;;  %2168 = vmatprep.mubr.msk.f32.mxu1 %vm1411_vm11, %v2714_v4 }
 0x281   : > { %2387 = vmatpush3.msra.mxu0 %v1108_v41  ;;  %v1052_v56 = vadd.f32 %v3181_v50, %v1020_v48  ;;  %v990_v59 = vld [vmem:[#allocation2 + $0x10] sm:$0xff]  ;;  %v991_v2 = vld [vmem:[#allocation2 + $0x18] sm:$0xff]  ;;  %v1004_v5 = vld [vmem:[#allocation2 + $0x80] sm:$0xff] }
 0x282   : > { %2388 = vmatprep.subr.mxu0 %v2625_v39  ;;  %v1022_v62 = vmul.f32 %v3174_v45, %v990_v59  ;;  %v1053_v1 = vadd.f32 %v3181_v50, %v1021_v57  ;;  %v1005_v6 = vld [vmem:[#allocation2 + $0x88] sm:$0xff]  ;;  %v1006_v9 = vld [vmem:[#allocation2 + $0x90] sm:$0xff]  ;;  %v1007_v10 = vld [vmem:[#allocation2 + $0x98] sm:$0xff]  ;;  %v1023_v58 = vmul.f32 %v3174_v45, %v991_v2  ;;  %v1036_v55 = vmul.f32 %v3174_v45, %v1004_v5 }
 0x283   : > { %2389 = vmatpush3.msra.mxu0 %v1107_v44  ;;  %v1077_v63 = vmax.f32 %v1052_v56, 0.0  ;;  %v1008_v8 = vld [vmem:[#allocation2 + $0xa0] sm:$0xff]  ;;  %v1009_v3 = vld [vmem:[#allocation2 + $0xa8] sm:$0xff]  ;;  %v1010_v0 = vld [vmem:[#allocation2 + $0xb0] sm:$0xff]  ;;  %v1037_v52 = vmul.f32 %v3174_v45, %v1005_v6  ;;  %v1038_v43 = vmul.f32 %v3174_v45, %v1006_v9  ;;  %v1039_v40 = vmul.f32 %v3174_v45, %v1007_v10 }
 0x284   : > { %2390 = vmatprep.subr.mxu0 %v2625_v39  ;;  %v1054_v61 = vadd.f32 %v3181_v50, %v1022_v62  ;;  %v1011_v49 = vld [vmem:[#allocation2 + $0xb8] sm:$0xff]  ;;  %v1078_v46 = vmax.f32 %v1053_v1, 0.0  ;;  %v1040_v11 = vmul.f32 %v3174_v45, %v1008_v8  ;;  %v992_v12 = vld [vmem:[#allocation2 + $0x20] sm:$0xff]  ;;  %v3215_v13 = vadd.f32 %v3181_v50, %v1036_v55  ;;  %v993_v27 = vld [vmem:[#allocation2 + $0x28] sm:$0xff] }
 0x285   : > { %2391 = vmatpush3.msra.mxu0 %v1106_v47  ;;  %v3218_v14 = vadd.f32 %v3181_v50, %v1037_v52  ;;  %v1041_v15 = vmul.f32 %v3174_v45, %v1009_v3  ;;  %v1042_v16 = vmul.f32 %v3174_v45, %v1010_v0  ;;  %v3223_v17 = vadd.f32 %v3181_v50, %v1038_v43  ;;  %v1012_v21 = vld [vmem:[#allocation2 + $0xc0] sm:$0xff]  ;;  %v994_v33 = vld [vmem:[#allocation2 + $0x30] sm:$0xff]  ;;  %v995_v37 = vld [vmem:[#allocation2 + $0x38] sm:$0xff] }
 0x286   : > { %2392 = vmatprep.subr.mxu0 %v2625_v39  ;;  %v3226_v18 = vadd.f32 %v3181_v50, %v1039_v40  ;;  %v3229_v19 = vadd.f32 %v3181_v50, %v1040_v11  ;;  %v1043_v20 = vmul.f32 %v3174_v45, %v1011_v49  ;;  %v1079_v24 = vmax.f32 %v1054_v61, 0.0  ;;  %v996_v47 = vld [vmem:[#allocation2 + $0x40] sm:$0xff]  ;;  %v999_v1 = vld [vmem:[#allocation2 + $0x58] sm:$0xff]  ;;  %v1001_v0 = vld [vmem:[#allocation2 + $0x68] sm:$0xff] }
 0x287   : > { %2393 = vmatpush3.msra.mxu0 %v1105_v53  ;;  %v3233_v22 = vadd.f32 %v3181_v50, %v1041_v15  ;;  %v3236_v23 = vadd.f32 %v3181_v50, %v1042_v16  ;;  %v1055_v7 = vadd.f32 %v3181_v50, %v1023_v58  ;;  %v1024_v25 = vmul.f32 %v3174_v45, %v992_v12  ;;  %v1000_v9 = vld [vmem:[#allocation2 + $0x60] sm:$0xff]  ;;  %v1002_v52 = vld [vmem:[#allocation2 + $0x70] sm:$0xff]  ;;  %v1003_v40 = vld [vmem:[#allocation2 + $0x78] sm:$0xff] }
 0x288   : > { %2394 = vmatprep.subr.mxu0 %v2625_v39  ;;  %v3242_v26 = vadd.f32 %v3181_v50, %v1043_v20  ;;  %v1044_v28 = vmul.f32 %v3174_v45, %v1012_v21  ;;  %v1025_v32 = vmul.f32 %v3174_v45, %v993_v27  ;;  %v1026_v36 = vmul.f32 %v3174_v45, %v994_v33 }
 0x289   : > { %2395 = vmatpush3.msra.mxu0 %v1104_v54  ;;  %v1080_v30 = vmax.f32 %v1055_v7, 0.0  ;;  %v1056_v31 = vadd.f32 %v3181_v50, %v1024_v25  ;;  %v1027_v44 = vmul.f32 %v3174_v45, %v995_v37  ;;  %v1028_v53 = vmul.f32 %v3174_v45, %v996_v47  ;;  %v997_v54 = vld [vmem:[#allocation2 + $0x48] sm:$0xff] }
 0x28a   : > { %2396 = vmatprep.subr.mxu0 %v2625_v39  ;;  %v3248_v29 = vadd.f32 %v3181_v50, %v1044_v28  ;;  %v1057_v35 = vadd.f32 %v3181_v50, %v1025_v32  ;;  %v1058_v42 = vadd.f32 %v3181_v50, %v1026_v36  ;;  %v1029_v59 = vmul.f32 %v3174_v45, %v997_v54 }
 0x28b   : > { %2397 = vmatpush3.msra.mxu0 %v1103_v38  ;;  %v1081_v34 = vmax.f32 %v1056_v31, 0.0  ;;  %v1059_v51 = vadd.f32 %v3181_v50, %v1027_v44  ;;  %v1060_v57 = vadd.f32 %v3181_v50, %v1028_v53  ;;  %v998_v38 = vld [vmem:[#allocation2 + $0x50] sm:$0xff]  ;;  %v1031_v6 = vmul.f32 %v3174_v45, %v999_v1 }
 0x28c   : > { %2398 = vmatprep.subr.mxu0 %v2625_v39  ;;  %v1082_v41 = vmax.f32 %v1057_v35, 0.0  ;;  %v1083_v48 = vmax.f32 %v1058_v42, 0.0  ;;  %v1061_v62 = vadd.f32 %v3181_v50, %v1029_v59  ;;  %v1032_v3 = vmul.f32 %v3174_v45, %v1000_v9 }
 0x28d   : > { %2399 = vmatpush3.msra.mxu0 %v1102_v60  ;;  %v1084_v56 = vmax.f32 %v1059_v51, 0.0  ;;  %v1085_v60 = vmax.f32 %v1060_v57, 0.0  ;;  %v1063_v8 = vadd.f32 %v3181_v50, %v1031_v6  ;;  %v1033_v55 = vmul.f32 %v3174_v45, %v1001_v0 }
 0x28e   : > { %2401 = vmatmul.mubr.msk.f32.vlgmr.msra.gmra.mxu0 %vm1117_vm10, %v1077_v63  ;;  %v1030_v63 = vmul.f32 %v3174_v45, %v998_v38  ;;  %v1086_v2 = vmax.f32 %v1061_v62, 0.0  ;;  %v1064_v58 = vadd.f32 %v3181_v50, %v1032_v3  ;;  %v1034_v43 = vmul.f32 %v3174_v45, %v1002_v52 }
 0x28f   : > { %2403 = vmatprep.mubr.msk.f32.mxu0 %vm2626_vm9, %v2625_v39  ;;  %v1088_v61 = vmax.f32 %v1063_v8, 0.0  ;;  %v1035_v15 = vmul.f32 %v3174_v45, %v1003_v40  ;;  %v1093_v45 = vmax.f32 %v3215_v13, 0.0  ;;  %v1096_v13 = vmax.f32 %v3226_v18, 0.0 }
 0x290   : > { %v1062_v5 = vadd.f32 %v3181_v50, %v1030_v63  ;;  %v1089_v49 = vmax.f32 %v1064_v58, 0.0  ;;  %v1066_v12 = vadd.f32 %v3181_v50, %v1034_v43  ;;  %v1099_v18 = vmax.f32 %v3236_v23, 0.0  ;;  %v3354_v23 = vld [vmem:[%s3898_s6] ss:$0 sm:$0xff] }
 0x291   : > { %v1067_v20 = vadd.f32 %v3181_v50, %v1035_v15 }
 0x292   : > { %2404 = vmatmul.mubr.msk.f32.gmra.mxu0 %vm1117_vm10, %v1078_v46  ;;  %v1087_v10 = vmax.f32 %v1062_v5, 0.0  ;;  %v1065_v46 = vadd.f32 %v3181_v50, %v1033_v55  ;;  %v1091_v16 = vmax.f32 %v1066_v12, 0.0  ;;  %v1094_v50 = vmax.f32 %v3218_v14, 0.0 }
 0x293   : > { %2406 = vmatprep.mubr.msk.f32.mxu0 %vm2626_vm9, %v2625_v39  ;;  %v1092_v21 = vmax.f32 %v1067_v20, 0.0  ;;  %v1097_v14 = vmax.f32 %v3229_v19, 0.0  ;;  %v1100_v19 = vmax.f32 %v3242_v26, 0.0 }
 0x294   : > { %v1090_v11 = vmax.f32 %v1065_v46, 0.0 }
 0x296   : > { %2407 = vmatmul.mubr.msk.f32.gmra.mxu0 %vm1117_vm10, %v1079_v24  ;;  %v1095_v24 = vmax.f32 %v3223_v17, 0.0  ;;  %v1098_v17 = vmax.f32 %v3233_v22, 0.0  ;;  %v1101_v22 = vmax.f32 %v3248_v29, 0.0 }
 0x297   : > { %2409 = vmatprep.mubr.msk.f32.mxu0 %vm2626_vm9, %v2625_v39 }
 0x29a   : > { %2410 = vmatmul.mubr.msk.f32.gmra.mxu0 %vm1117_vm10, %v1080_v30 }
 0x29b   : > { %2412 = vmatprep.mubr.msk.f32.mxu0 %vm2626_vm9, %v2625_v39 }
 0x29e   : > { %2413 = vmatmul.mubr.msk.f32.gmra.mxu0 %vm1117_vm10, %v1081_v34 }
 0x29f   : > { %2415 = vmatprep.mubr.msk.f32.mxu0 %vm2626_vm9, %v2625_v39 }
 0x2a2   : > { %2416 = vmatmul.mubr.msk.f32.gmra.mxu0 %vm1117_vm10, %v1082_v41 }
 0x2a3   : > { %2418 = vmatprep.mubr.msk.f32.mxu0 %vm2626_vm9, %v2625_v39 }
 0x2a6   : > { %2419 = vmatmul.mubr.msk.f32.gmra.mxu0 %vm1117_vm10, %v1083_v48 }
 0x2a7   : > { %2421 = vmatprep.mubr.msk.f32.mxu0 %vm2626_vm9, %v2625_v39 }
 0x2aa   : > { %2422 = vmatmul.mubr.msk.f32.gmra.mxu0 %vm1117_vm10, %v1084_v56 }
 0x2ab   : > { %2424 = vmatprep.mubr.msk.f32.mxu0 %vm2626_vm9, %v2625_v39 }
 0x2ae   : > { %2425 = vmatmul.mubr.msk.f32.gmra.mxu0 %vm1117_vm10, %v1085_v60 }
 0x2af   : > { %2427 = vmatprep.mubr.msk.f32.mxu0 %vm2626_vm9, %v2625_v39 }
 0x2b2   : > { %2428 = vmatmul.mubr.msk.f32.gmra.mxu0 %vm1117_vm10, %v1086_v2 }
 0x2b3   : > { %2430 = vmatprep.mubr.msk.f32.mxu0 %vm2626_vm9, %v2625_v39 }
 0x2b6   : > { %2431 = vmatmul.mubr.msk.f32.gmra.mxu0 %vm1117_vm10, %v1087_v10 }
 0x2b7   : > { %2433 = vmatprep.mubr.msk.f32.mxu0 %vm2626_vm9, %v2625_v39 }
 0x2ba   : > { %2434 = vmatmul.mubr.msk.f32.gmra.mxu0 %vm1117_vm10, %v1088_v61 }
 0x2bb   : > { %2436 = vmatprep.mubr.msk.f32.mxu0 %vm2626_vm9, %v2625_v39 }
 0x2be   : > { %2437 = vmatmul.mubr.msk.f32.gmra.mxu0 %vm1117_vm10, %v1089_v49 }
 0x2bf   : > { %2439 = vmatprep.mubr.msk.f32.mxu0 %vm2626_vm9, %v2625_v39 }
 0x2c2   : > { %2440 = vmatmul.mubr.msk.f32.gmra.mxu0 %vm1117_vm10, %v1090_v11 }
 0x2c3   : > { %2442 = vmatprep.mubr.msk.f32.mxu0 %vm2626_vm9, %v2625_v39 }
 0x2c6   : > { %2443 = vmatmul.mubr.msk.f32.gmra.mxu0 %vm1117_vm10, %v1091_v16 }
 0x2c7   : > { %2445 = vmatprep.mubr.msk.f32.mxu0 %vm2626_vm9, %v2625_v39 }
 0x2ca   : > { %2446 = vmatmul.mubr.msk.f32.gmra.mxu0 %vm1117_vm10, %v1092_v21 }
 0x2cb   : > { %2448 = vmatprep.mubr.msk.f32.mxu0 %vm2626_vm9, %v2625_v39 }
 0x2ce   : > { %2449 = vmatmul.mubr.msk.f32.gmra.mxu0 %vm1117_vm10, %v1093_v45 }
 0x2cf   : > { %2451 = vmatprep.mubr.msk.f32.mxu0 %vm2626_vm9, %v2625_v39 }
 0x2d2   : > { %2452 = vmatmul.mubr.msk.f32.gmra.mxu0 %vm1117_vm10, %v1094_v50 }
 0x2d3   : > { %2454 = vmatprep.mubr.msk.f32.mxu0 %vm2626_vm9, %v2625_v39 }
 0x2d6   : > { %2455 = vmatmul.mubr.msk.f32.gmra.mxu0 %vm1117_vm10, %v1095_v24 }
 0x2d7   : > { %2457 = vmatprep.mubr.msk.f32.mxu0 %vm2626_vm9, %v2625_v39 }
 0x2da   : > { %2458 = vmatmul.mubr.msk.f32.gmra.mxu0 %vm1117_vm10, %v1096_v13 }
 0x2db   : > { %2460 = vmatprep.mubr.msk.f32.mxu0 %vm2626_vm9, %v2625_v39 }
 0x2de   : > { %2461 = vmatmul.mubr.msk.f32.gmra.mxu0 %vm1117_vm10, %v1097_v14 }
 0x2df   : > { %2463 = vmatprep.mubr.msk.f32.mxu0 %vm2626_vm9, %v2625_v39 }
 0x2e2   : > { %2464 = vmatmul.mubr.msk.f32.gmra.mxu0 %vm1117_vm10, %v1098_v17 }
 0x2e3   : > { %2466 = vmatprep.mubr.msk.f32.mxu0 %vm2626_vm9, %v2625_v39 }
 0x2e6   : > { %2467 = vmatmul.mubr.msk.f32.gmra.mxu0 %vm1117_vm10, %v1099_v18 }
 0x2e7   : > { %2469 = vmatprep.mubr.msk.f32.mxu0 %vm2626_vm9, %v2625_v39 }
 0x2ea   : > { %2470 = vmatmul.mubr.msk.f32.gmra.mxu0 %vm1117_vm10, %v1100_v19 }
 0x2eb   : > { %2472 = vmatprep.mubr.msk.f32.mxu0 %vm2626_vm9, %v2625_v39 }
 0x2ee   : > { %2473 = vmatmul.mubr.msk.f32.gmra.mxu0 %vm1117_vm10, %v1101_v22 }
 0x34e   : > { %v1259_v7 = vpop.f32.mrf.mxu0 }
 0x34f   : > { %v3357_v25 = vadd.f32 %v3354_v23, %v1259_v7 }
 0x350   : > { %v2402_v26 = vpop.f32.mrf.mxu0 }
 0x351   : > { %1385 = vst.msk [vmem:[#allocation3] sm:$0xff] %vm1384_vm12, %v3357_v25 }
 0x352   : > { %v1264_v27 = vpop.f32.mrf.mxu0 }
 0x353   : > { %v3362_v28 = vadd.f32 %v3354_v23, %v1264_v27 }
 0x354   : > { %v2405_v29 = vpop.f32.mrf.mxu0 }
 0x355   : > { %1386 = vst.msk [vmem:[#allocation3 + $0x8] sm:$0xff] %vm1384_vm12, %v3362_v28 }
 0x356   : > { %v1269_v30 = vpop.f32.mrf.mxu0 }
 0x357   : > { %v3367_v31 = vadd.f32 %v3354_v23, %v1269_v30 }
 0x358   : > { %v2408_v32 = vpop.f32.mrf.mxu0 }
 0x359   : > { %1387 = vst.msk [vmem:[#allocation3 + $0x10] sm:$0xff] %vm1384_vm12, %v3367_v31 }
 0x35a   : > { %v1274_v33 = vpop.f32.mrf.mxu0 }
 0x35b   : > { %v3372_v34 = vadd.f32 %v3354_v23, %v1274_v33 }
 0x35c   : > { %v2411_v35 = vpop.f32.mrf.mxu0 }
 0x35d   : > { %1388 = vst.msk [vmem:[#allocation3 + $0x18] sm:$0xff] %vm1384_vm12, %v3372_v34 }
 0x35e   : > { %v1279_v36 = vpop.f32.mrf.mxu0 }
 0x35f   : > { %v3377_v37 = vadd.f32 %v3354_v23, %v1279_v36 }
 0x360   : > { %v2414_v41 = vpop.f32.mrf.mxu0 }
 0x361   : > { %1389 = vst.msk [vmem:[#allocation3 + $0x20] sm:$0xff] %vm1384_vm12, %v3377_v37 }
 0x362   : > { %v1284_v42 = vpop.f32.mrf.mxu0 }
 0x363   : > { %v3382_v44 = vadd.f32 %v3354_v23, %v1284_v42 }
 0x364   : > { %v2417_v47 = vpop.f32.mrf.mxu0 }
 0x365   : > { %1390 = vst.msk [vmem:[#allocation3 + $0x28] sm:$0xff] %vm1384_vm12, %v3382_v44 }
 0x366   : > { %v1289_v48 = vpop.f32.mrf.mxu0 }
 0x367   : > { %v3387_v51 = vadd.f32 %v3354_v23, %v1289_v48 }
 0x368   : > { %v2420_v53 = vpop.f32.mrf.mxu0 }
 0x369   : > { %1391 = vst.msk [vmem:[#allocation3 + $0x30] sm:$0xff] %vm1384_vm12, %v3387_v51 }
 0x36a   : > { %v1294_v54 = vpop.f32.mrf.mxu0 }
 0x36b   : > { %v3392_v56 = vadd.f32 %v3354_v23, %v1294_v54  ;;  %v2627_v54 = vmov 1.0  }
 0x36c   : > { %v2423_v57 = vpop.f32.mrf.mxu0 }
 0x36d   : > { %1392 = vst.msk [vmem:[#allocation3 + $0x38] sm:$0xff] %vm1384_vm12, %v3392_v56 }
 0x36e   : > { %v1299_v59 = vpop.f32.mrf.mxu0 }
 0x36f   : > { %v3397_v38 = vadd.f32 %v3354_v23, %v1299_v59 }
 0x370   : > { %v2426_v60 = vpop.f32.mrf.mxu0 }
 0x371   : > { %1393 = vst.msk [vmem:[#allocation3 + $0x40] sm:$0xff] %vm1384_vm12, %v3397_v38 }
 0x372   : > { %v1304_v62 = vpop.f32.mrf.mxu0 }
 0x373   : > { %v3402_v63 = vadd.f32 %v3354_v23, %v1304_v62 }
 0x374   : > { %v2429_v1 = vpop.f32.mrf.mxu0 }
 0x375   : > { %1394 = vst.msk [vmem:[#allocation3 + $0x48] sm:$0xff] %vm1384_vm12, %v3402_v63  ;;  %v1498_v1 = vmul.f32 %v3402_v63, %v3402_v63 }
 0x376   : > { %v1309_v2 = vpop.f32.mrf.mxu0 }
 0x377   : > { %v3407_v5 = vadd.f32 %v3354_v23, %v1309_v2  ;;  %v1497_v2 = vmul.f32 %v3397_v38, %v3397_v38 }
 0x378   : > { %v2432_v6 = vpop.f32.mrf.mxu0 }
 0x379   : > { %1395 = vst.msk [vmem:[#allocation3 + $0x50] sm:$0xff] %vm1384_vm12, %v3407_v5  ;;  %v1496_v6 = vmul.f32 %v3392_v56, %v3392_v56 }
 0x37a   : > { %v1314_v9 = vpop.f32.mrf.mxu0 }
 0x37b   : > { %v3412_v10 = vadd.f32 %v3354_v23, %v1314_v9 }
 0x37c   : > { %v2435_v8 = vpop.f32.mrf.mxu0 }
 0x37d   : > { %1396 = vst.msk [vmem:[#allocation3 + $0x58] sm:$0xff] %vm1384_vm12, %v3412_v10  ;;  %v1500_v62 = vmul.f32 %v3412_v10, %v3412_v10 }
 0x37e   : > { %v1319_v3 = vpop.f32.mrf.mxu0 }
 0x37f   : > { %v3417_v0 = vadd.f32 %v3354_v23, %v1319_v3 }
 0x380   : > { %v2438_v61 = vpop.f32.mrf.mxu0 }
 0x381   : > { %1397 = vst.msk [vmem:[#allocation3 + $0x60] sm:$0xff] %vm1384_vm12, %v3417_v0  ;;  %v1501_v60 = vmul.f32 %v3417_v0, %v3417_v0  ;;  %v1410_v61 = vld [vmem:[#allocation6] sm:$0x1] }
 0x382   : > { %v1324_v58 = vpop.f32.mrf.mxu0 }
 0x383   : > { %v3422_v55 = vadd.f32 %v3354_v23, %v1324_v58 }
 0x384   : > { %v2441_v52 = vpop.f32.mrf.mxu0 }
 0x385   : > { %1398 = vst.msk [vmem:[#allocation3 + $0x68] sm:$0xff] %vm1384_vm12, %v3422_v55  ;;  %v1502_v59 = vmul.f32 %v3422_v55, %v3422_v55 }
 0x386   : > { %v1329_v49 = vpop.f32.mrf.mxu0 }
 0x387   : > { %v3427_v46 = vadd.f32 %v3354_v23, %v1329_v49  ;;  %v1488_v49 = vld [vmem:[#allocation7] sm:$0x1] }
 0x388   : > { %v2444_v43 = vpop.f32.mrf.mxu0 }
 0x389   : > { %1399 = vst.msk [vmem:[#allocation3 + $0x70] sm:$0xff] %vm1384_vm12, %v3427_v46  ;;  %v1503_v57 = vmul.f32 %v3427_v46, %v3427_v46 }
 0x38a   : > { %v1334_v40 = vpop.f32.mrf.mxu0 }
 0x38b   : > { %v3432_v11 = vadd.f32 %v3354_v23, %v1334_v40 }
 0x38c   : > { %v2447_v12 = vpop.f32.mrf.mxu0 }
 0x38d   : > { %1400 = vst.msk [vmem:[#allocation3 + $0x78] sm:$0xff] %vm1384_vm12, %v3432_v11  ;;  %1416 = vmatpush1.msra.mxu1 %v3432_v11 }
 0x38e   : > { %v1339_v15 = vpop.f32.mrf.mxu0  ;;  %1417 = vmatprep.subr.mxu1 %v2625_v39 }
 0x38f   : > { %v3439_v16 = vadd.f32 %v3354_v23, %v1339_v15  ;;  %1418 = vmatpush1.msra.mxu1 %v3427_v46 }
 0x390   : > { %v2450_v20 = vpop.f32.mrf.mxu0  ;;  %1419 = vmatprep.subr.mxu1 %v2625_v39 }
 0x391   : > { %1401 = vst.msk [vmem:[#allocation3 + $0x80] sm:$0xff] %vm1384_vm12, %v3439_v16  ;;  %1420 = vmatpush1.msra.mxu1 %v3422_v55 }
 0x392   : > { %v1344_v21 = vpop.f32.mrf.mxu0  ;;  %1421 = vmatprep.subr.mxu1 %v2625_v39 }
 0x393   : > { %v3448_v45 = vadd.f32 %v3354_v23, %v1344_v21  ;;  %1422 = vmatpush1.msra.mxu1 %v3417_v0  ;;  %v1505_v0 = vmul.f32 %v3439_v16, %v3439_v16 }
 0x394   : > { %v2453_v50 = vpop.f32.mrf.mxu0  ;;  %1423 = vmatprep.subr.mxu1 %v2625_v39 }
 0x395   : > { %1402 = vst.msk [vmem:[#allocation3 + $0x88] sm:$0xff] %vm1384_vm12, %v3448_v45  ;;  %1424 = vmatpush1.msra.mxu1 %v3412_v10  ;;  %v1506_v3 = vmul.f32 %v3448_v45, %v3448_v45 }
 0x396   : > { %v1349_v24 = vpop.f32.mrf.mxu0  ;;  %1425 = vmatprep.subr.mxu1 %v2625_v39 }
 0x397   : > { %v3457_v13 = vadd.f32 %v3354_v23, %v1349_v24  ;;  %1426 = vmatpush1.msra.mxu1 %v3407_v5 }
 0x398   : > { %v2456_v14 = vpop.f32.mrf.mxu0  ;;  %1427 = vmatprep.subr.mxu1 %v2625_v39 }
 0x399   : > { %1403 = vst.msk [vmem:[#allocation3 + $0x90] sm:$0xff] %vm1384_vm12, %v3457_v13  ;;  %1428 = vmatpush1.msra.mxu1 %v3402_v63  ;;  %v1494_v63 = vmul.f32 %v3382_v44, %v3382_v44  ;;  %v1507_v8 = vmul.f32 %v3457_v13, %v3457_v13 }
 0x39a   : > { %v1354_v17 = vpop.f32.mrf.mxu0  ;;  %1429 = vmatprep.subr.mxu1 %v2625_v39 }
 0x39b   : > { %v3466_v18 = vadd.f32 %v3354_v23, %v1354_v17  ;;  %1430 = vmatpush1.msra.mxu1 %v3397_v38  ;;  %v1493_v38 = vmul.f32 %v3377_v37, %v3377_v37 }
 0x39c   : > { %v2459_v19 = vpop.f32.mrf.mxu0  ;;  %1431 = vmatprep.subr.mxu1 %v2625_v39 }
 0x39d   : > { %1404 = vst.msk [vmem:[#allocation3 + $0x98] sm:$0xff] %vm1384_vm12, %v3466_v18  ;;  %1432 = vmatpush1.msra.mxu1 %v3392_v56  ;;  %v1492_v56 = vmul.f32 %v3372_v34, %v3372_v34  ;;  %v1508_v10 = vmul.f32 %v3466_v18, %v3466_v18 }
 0x39e   : > { %v1359_v22 = vpop.f32.mrf.mxu0  ;;  %1433 = vmatprep.subr.mxu1 %v2625_v39 }
 0x39f   : > { %v3475_v7 = vadd.f32 %v3354_v23, %v1359_v22  ;;  %1434 = vmatpush1.msra.mxu1 %v3387_v51 }
 0x3a0   : > { %v2462_v26 = vpop.f32.mrf.mxu0  ;;  %1435 = vmatprep.subr.mxu1 %v2625_v39 }
 0x3a1   : > { %1405 = vst.msk [vmem:[#allocation3 + $0xa0] sm:$0xff] %vm1384_vm12, %v3475_v7  ;;  %1436 = vmatpush1.msra.mxu1 %v3382_v44  ;;  %v1490_v44 = vmul.f32 %v3362_v28, %v3362_v28  ;;  %v1509_v9 = vmul.f32 %v3475_v7, %v3475_v7 }
 0x3a2   : > { %v1364_v27 = vpop.f32.mrf.mxu0  ;;  %1437 = vmatprep.subr.mxu1 %v2625_v39 }
 0x3a3   : > { %v3484_v29 = vadd.f32 %v3354_v23, %v1364_v27  ;;  %1438 = vmatpush1.msra.mxu1 %v3377_v37  ;;  %v1489_v37 = vmul.f32 %v3357_v25, %v3357_v25 }
 0x3a4   : > { %v2465_v30 = vpop.f32.mrf.mxu0  ;;  %1439 = vmatprep.subr.mxu1 %v2625_v39 }
 0x3a5   : > { %1406 = vst.msk [vmem:[#allocation3 + $0xa8] sm:$0xff] %vm1384_vm12, %v3484_v29  ;;  %1440 = vmatpush1.msra.mxu1 %v3372_v34 }
 0x3a6   : > { %v1369_v32 = vpop.f32.mrf.mxu0  ;;  %1441 = vmatprep.subr.mxu1 %v2625_v39 }
 0x3a7   : > { %v3493_v33 = vadd.f32 %v3354_v23, %v1369_v32  ;;  %1442 = vmatpush1.msra.mxu1 %v3367_v31 }
 0x3a8   : > { %v2468_v35 = vpop.f32.mrf.mxu0  ;;  %1443 = vmatprep.subr.mxu1 %v2625_v39 }
 0x3a9   : > { %1407 = vst.msk [vmem:[#allocation3 + $0xb0] sm:$0xff] %vm1384_vm12, %v3493_v33  ;;  %1444 = vmatpush1.msra.mxu1 %v3362_v28  ;;  %v1511_v28 = vmul.f32 %v3493_v33, %v3493_v33 }
 0x3aa   : > { %v1374_v36 = vpop.f32.mrf.mxu0  ;;  %1445 = vmatprep.subr.mxu1 %v2625_v39 }
 0x3ab   : > { %v3502_v41 = vadd.f32 %v3354_v23, %v1374_v36  ;;  %1446 = vmatpush1.msra.mxu1 %v3357_v25  ;;  %v1510_v25 = vmul.f32 %v3484_v29, %v3484_v29 }
 0x3ac   : > { %v2471_v42 = vpop.f32.mrf.mxu0  ;;  %1461 = vmatprep.subr.mxu1 %v2625_v39 }
 0x3ad   : > { %1408 = vst.msk [vmem:[#allocation3 + $0xb8] sm:$0xff] %vm1384_vm12, %v3502_v41 }
 0x3ae   : > { %v1379_v47 = vpop.f32.mrf.mxu0 }
 0x3af   : > { %v3509_v48 = vadd.f32 %v3354_v23, %v1379_v47  ;;  %v1504_v23 = vmul.f32 %v3432_v11, %v3432_v11 }
 0x3b0   : > { %v2474_v53 = vpop.f32.mrf.mxu0 }
 0x3b1   : > { %1409 = vst.msk [vmem:[#allocation3 + $0xc0] sm:$0xff] %vm1384_vm12, %v3509_v48  ;;  %1462 = vmatpush2.msra.mxu1 %v3509_v48  ;;  %v1513_v34 = vmul.f32 %v3509_v48, %v3509_v48 }
 0x3b2   : > { %1463 = vmatprep.subr.mxu1 %v2625_v39 }
 0x3b3   : > { %1464 = vmatpush2.msra.mxu1 %v3502_v41 }
 0x3b4   : > { %1465 = vmatprep.subr.mxu1 %v2625_v39 }
 0x3b5   : > { %1466 = vmatpush2.msra.mxu1 %v3493_v33 }
 0x3b6   : > { %1467 = vmatprep.subr.mxu1 %v2625_v39 }
 0x3b7   : > { %1468 = vmatpush2.msra.mxu1 %v3484_v29 }
 0x3b8   : > { %1469 = vmatprep.subr.mxu1 %v2625_v39 }
 0x3b9   : > { %1470 = vmatpush2.msra.mxu1 %v3475_v7 }
 0x3ba   : > { %1471 = vmatprep.subr.mxu1 %v2625_v39 }
 0x3bb   : > { %1472 = vmatpush2.msra.mxu1 %v3466_v18 }
 0x3bc   : > { %1473 = vmatprep.subr.mxu1 %v2625_v39 }
 0x3bd   : > { %1474 = vmatpush2.msra.mxu1 %v3457_v13 }
 0x3be   : > { %1475 = vmatprep.subr.mxu1 %v2625_v39 }
 0x3bf   : > { %1476 = vmatpush2.msra.mxu1 %v3448_v45 }
 0x3c0   : > { %1477 = vmatprep.subr.mxu1 %v2625_v39 }
 0x3c1   : > { %1478 = vmatpush2.msra.mxu1 %v3439_v16 }
 0x3c2   : > { %1480 = vmatmul.mubr.f32.vlgmr.msra.gmra.mxu1 %v2627_v54  ;;  %1514 = vmatprep.subr.mxu1 %v2625_v39 }
 0x3c3   : > { %1515 = vmatpush1.msra.mxu1 %v1504_v23  ;;  %2169 = vmatprep.mubr.msk.f32.mxu1 %vm1411_vm11, %v2714_v4  ;;  %v1499_v4 = vmul.f32 %v3407_v5, %v3407_v5  ;;  %v1495_v5 = vmul.f32 %v3387_v51, %v3387_v51  ;;  %v1491_v51 = vmul.f32 %v3367_v31, %v3367_v31 }
 0x3c4   : > { %1516 = vmatprep.subr.mxu1 %v2625_v39  ;;  %v1512_v31 = vmul.f32 %v3502_v41, %v3502_v41 }
 0x3c5   : > { %1517 = vmatpush1.msra.mxu1 %v1503_v57 }
 0x3c6   : > { %1518 = vmatprep.subr.mxu1 %v2625_v39 }
 0x3c7   : > { %1519 = vmatpush1.msra.mxu1 %v1502_v59 }
 0x3c8   : > { %1520 = vmatprep.subr.mxu1 %v2625_v39 }
 0x3c9   : > { %1521 = vmatpush1.msra.mxu1 %v1501_v60 }
 0x3ca   : > { %1522 = vmatprep.subr.mxu1 %v2625_v39 }
 0x3cb   : > { %1523 = vmatpush1.msra.mxu1 %v1500_v62 }
 0x3cc   : > { %1524 = vmatprep.subr.mxu1 %v2625_v39 }
 0x3cd   : > { %1525 = vmatpush1.msra.mxu1 %v1499_v4 }
 0x3ce   : > { %1526 = vmatprep.subr.mxu1 %v2625_v39 }
 0x3cf   : > { %1527 = vmatpush1.msra.mxu1 %v1498_v1 }
 0x3d0   : > { %1528 = vmatprep.subr.mxu1 %v2625_v39 }
 0x3d1   : > { %1529 = vmatpush1.msra.mxu1 %v1497_v2 }
 0x3d2   : > { %1530 = vmatprep.subr.mxu1 %v2625_v39 }
 0x3d3   : > { %1531 = vmatpush1.msra.mxu1 %v1496_v6 }
 0x3d4   : > { %1532 = vmatprep.subr.mxu1 %v2625_v39 }
 0x3d5   : > { %1533 = vmatpush1.msra.mxu1 %v1495_v5 }
 0x3d6   : > { %1534 = vmatprep.subr.mxu1 %v2625_v39 }
 0x3d7   : > { %1535 = vmatpush1.msra.mxu1 %v1494_v63 }
 0x3d8   : > { %1536 = vmatprep.subr.mxu1 %v2625_v39 }
 0x3d9   : > { %1537 = vmatpush1.msra.mxu1 %v1493_v38 }
 0x3da   : > { %1538 = vmatprep.subr.mxu1 %v2625_v39 }
 0x3db   : > { %1539 = vmatpush1.msra.mxu1 %v1492_v56 }
 0x3dc   : > { %1540 = vmatprep.subr.mxu1 %v2625_v39 }
 0x3dd   : > { %1541 = vmatpush1.msra.mxu1 %v1491_v51 }
 0x3de   : > { %1542 = vmatprep.subr.mxu1 %v2625_v39 }
 0x3df   : > { %1543 = vmatpush1.msra.mxu1 %v1490_v44 }
 0x3e0   : > { %1544 = vmatprep.subr.mxu1 %v2625_v39 }
 0x3e1   : > { %1545 = vmatpush1.msra.mxu1 %v1489_v37 }
 0x3e2   : > { %1560 = vmatprep.subr.mxu1 %v2625_v39 }
 0x3e3   : > { %1561 = vmatpush2.msra.mxu1 %v1513_v34 }
 0x3e4   : > { %1562 = vmatprep.subr.mxu1 %v2625_v39 }
 0x3e5   : > { %1563 = vmatpush2.msra.mxu1 %v1512_v31 }
 0x3e6   : > { %1564 = vmatprep.subr.mxu1 %v2625_v39 }
 0x3e7   : > { %1565 = vmatpush2.msra.mxu1 %v1511_v28 }
 0x3e8   : > { %1566 = vmatprep.subr.mxu1 %v2625_v39 }
 0x3e9   : > { %1567 = vmatpush2.msra.mxu1 %v1510_v25 }
 0x3ea   : > { %1568 = vmatprep.subr.mxu1 %v2625_v39 }
 0x3eb   : > { %1569 = vmatpush2.msra.mxu1 %v1509_v9 }
 0x3ec   : > { %1570 = vmatprep.subr.mxu1 %v2625_v39 }
 0x3ed   : > { %1571 = vmatpush2.msra.mxu1 %v1508_v10 }
 0x3ee   : > { %1572 = vmatprep.subr.mxu1 %v2625_v39 }
 0x3ef   : > { %1573 = vmatpush2.msra.mxu1 %v1507_v8 }
 0x3f0   : > { %1574 = vmatprep.subr.mxu1 %v2625_v39 }
 0x3f1   : > { %1575 = vmatpush2.msra.mxu1 %v1506_v3 }
 0x3f2   : > { %1576 = vmatprep.subr.mxu1 %v2625_v39 }
 0x3f3   : > { %1577 = vmatpush2.msra.mxu1 %v1505_v0 }
 0x3f4   : > { %1579 = vmatmul.mubr.f32.vlgmr.msra.gmra.mxu1 %v2627_v54 }
 0x482   : > { %v1481_v58 = vpop.f32.mrf.mxu1 }
 0x483   : > { %v1485_v55 = vadd.f32 %v1481_v58, %v1410_v61 }
 0x484   : > { %v1483_v52 = vpop.f32.mrf.mxu1 }
 0x485   : > { %1487 = vst.msk [vmem:[#allocation6] sm:$0x1] %vm1486_vm13, %v1485_v55 }
 0x4b4   : > { %v1580_v46 = vpop.f32.mrf.mxu1 }
 0x4b5   : > { %v1584_v43 = vadd.f32 %v1580_v46, %v1488_v49 }
 0x4b6   : > { %v1582_v40 = vpop.f32.mrf.mxu1 }
 0x4b7   : > { %1585 = vst.msk [vmem:[#allocation7] sm:$0x1] %vm1486_vm13, %v1584_v43 }
 0x4b8 PF: > { %p1586_p8 = scmp.eq.s32.totalorder %s2610_s19, 2 }
 0x4b9   : > { %v1591_v11 = vld [vmem:[#allocation6] sm:$0x1] (%p1586_p8)  ;;  %v1593_v50 = vld [vmem:[%s3899_s7] sm:$0x1] (%p1586_p8)  ;;  %vm1605_vm14 = vcmask (%p1586_p8), 122880  }
 0x4ba   : > { %1590 = sbr.rel (!%p1586_p8) target bundleno = 1244 (0x4dc), region = 84  ;;  %v1595_v12 = vmul.f32 (%p1586_p8), 0.005, %v1591_v11  ;;  %v1594_v14 = vld [vmem:[%s3900_s8] sm:$0x1] (%p1586_p8) }
 0x4bc   : > { %v1597_v16 = vmul.f32 (%p1586_p8), %v1595_v12, %v1595_v12 }
 0x4be   : > { %v1592_v39 = vld [vmem:[#allocation7] sm:$0x1] (%p1586_p8) }
 0x4bf   : > { %v1596_v15 = vmul.f32 0.005, %v1592_v39 }
 0x4c1   : > { %v1598_v20 = vsub.f32 %v1596_v15, %v1597_v16 }
 0x4c3   : > { %v1599_v21 = vmax.f32 %v1598_v20, 0.0 }
 0x4c5   : > { %v1600_v45 = vadd.f32 1e-05, %v1599_v21 }
 0x4c7   : > { %2594 = vrsqrt.f32 %v1600_v45 }
 0x4d4   : > { %v2595_v24 = vpop.eup %2594 }
 0x4d5   : > { %v1602_v13 = vmul.f32 %v2595_v24, %v1593_v50 }
 0x4d7   : > { %1606 = vst.msk [vmem:[#allocation10] sm:$0x1] %vm1605_vm14, %v1602_v13  ;;  %v1603_v17 = vmul.f32 %v1602_v13, %v1595_v12 }
 0x4d9   : > { %v1604_v18 = vsub.f32 %v1594_v14, %v1603_v17 }
 0x4db   : > { %1607 = vst.msk [vmem:[#allocation11] sm:$0x1] %vm1605_vm14, %v1604_v18 }
 0x4dc PF: > { %p2171_p9 = scmp.ne.s32.totalorder %s2610_s19, 2 }
 0x4dd   : > { %s1728_s19 = sld [smem:[#allocation12]] (!%p2171_p9) }
 0x4de   : > { %1610 = sbr.rel (%p2171_p9) target bundleno = 1503 (0x5df), region = 88 }
 0x4e3   : > { %v1727_v19 = vld [vmem:[%s3901_s9 + $0x8] sm:$0xff]  ;;  %v1726_v22 = vld [vmem:[%s3901_s9] sm:$0xff]  ;;  %v2628_v26 = vmov 0.0   ;;  %v3625_v27 = vld [vmem:[#allocation10] ss:$0 sm:$0xff]  ;;  %vm2629_vm15 = vmmov 0  }
 0x4e4   : > { %v1612_v7 = vld [vmem:[#allocation3] sm:$0xff]  ;;  %2475 = vmatprep.subr.mxu0 %v2628_v26  ;;  %2554 = vmatprep.subr.mxu1 %v2628_v26  ;;  %v3627_v29 = vld [vmem:[#allocation11] ss:$0 sm:$0xff]  ;;  %v1626_v36 = vld [vmem:[#allocation3 + $0x70] sm:$0xff]  ;;  %vm1730_vm0 = vcmask 130048   ;;  %vm1996_vm1 = vcmask 7168  }
 0x4e5   : > { %v1625_v30 = vld [vmem:[#allocation3 + $0x68] sm:$0xff]  ;;  %2476 = vmatpush3.msra.mxu0 %v1727_v19  ;;  %2556 = vmatpush3.msra.mxu1 %v1727_v19  ;;  %v1644_v32 = vmul.f32 %v3625_v27, %v1612_v7  ;;  %v1614_v41 = vld [vmem:[#allocation3 + $0x10] sm:$0xff]  ;;  %v1658_v47 = vmul.f32 %v3625_v27, %v1626_v36  ;;  %v1627_v53 = vld [vmem:[#allocation3 + $0x78] sm:$0xff] }
 0x4e6   : > { %v1657_v33 = vmul.f32 %v3625_v27, %v1625_v30  ;;  %v1613_v35 = vld [vmem:[#allocation3 + $0x8] sm:$0xff]  ;;  %2477 = vmatprep.subr.mxu0 %v2628_v26  ;;  %2479 = vmatprep.mubr.msk.f32.mxu0 %vm2629_vm15, %v2628_v26  ;;  %v1646_v48 = vmul.f32 %v3625_v27, %v1614_v41  ;;  %v1659_v57 = vmul.f32 %v3625_v27, %v1627_v53  ;;  %v1615_v59 = vld [vmem:[#allocation3 + $0x18] sm:$0xff]  ;;  %v1628_v4 = vld [vmem:[#allocation3 + $0x80] sm:$0xff] }
 0x4e7   : > { %v1645_v42 = vmul.f32 %v3625_v27, %v1613_v35  ;;  %2478 = vmatpush3.msra.mxu0 %v1726_v22  ;;  %2555 = vmatprep.subr.mxu1 %v2628_v26  ;;  %v1676_v23 = vadd.f32 %v3627_v29, %v1644_v32  ;;  %v1690_v62 = vadd.f32 %v3627_v29, %v1658_v47  ;;  %v1616_v44 = vld [vmem:[#allocation3 + $0x20] sm:$0xff]  ;;  %v1629_v37 = vld [vmem:[#allocation3 + $0x88] sm:$0xff]  ;;  %v1630_v3 = vld [vmem:[#allocation3 + $0x90] sm:$0xff] }
 0x4e8   : > { %v1689_v54 = vadd.f32 %v3627_v29, %v1657_v33  ;;  %2557 = vmatpush3.msra.mxu1 %v1726_v22  ;;  %2518 = vmatprep.mubr.msk.f32.mxu1 %vm2629_vm15, %v2628_v26  ;;  %v1678_v6 = vadd.f32 %v3627_v29, %v1646_v48  ;;  %v1647_v5 = vmul.f32 %v3625_v27, %v1615_v59  ;;  %v1617_v8 = vld [vmem:[#allocation3 + $0x28] sm:$0xff]  ;;  %v1618_v46 = vld [vmem:[#allocation3 + $0x30] sm:$0xff]  ;;  %v1631_v43 = vld [vmem:[#allocation3 + $0x98] sm:$0xff] }
 0x4e9   : > { %v1677_v60 = vadd.f32 %v3627_v29, %v1645_v42  ;;  %v1701_v1 = vmax.f32 %v1676_v23, 0.0  ;;  %v1715_v38 = vmax.f32 %v1690_v62, 0.0  ;;  %v1691_v56 = vadd.f32 %v3627_v29, %v1659_v57  ;;  %v1619_v20 = vld [vmem:[#allocation3 + $0x38] sm:$0xff]  ;;  %v1632_v21 = vld [vmem:[#allocation3 + $0xa0] sm:$0xff]  ;;  %v1633_v19 = vld [vmem:[#allocation3 + $0xa8] sm:$0xff] }
 0x4ea   : > { %v1714_v2 = vmax.f32 %v1689_v54, 0.0  ;;  %v1660_v51 = vmul.f32 %v3625_v27, %v1628_v4  ;;  %v1703_v34 = vmax.f32 %v1678_v6, 0.0  ;;  %v1679_v31 = vadd.f32 %v3627_v29, %v1647_v5  ;;  %v1620_v18 = vld [vmem:[#allocation3 + $0x40] sm:$0xff]  ;;  %v1621_v36 = vld [vmem:[#allocation3 + $0x48] sm:$0xff]  ;;  %v1634_v41 = vld [vmem:[#allocation3 + $0xb0] sm:$0xff] }
 0x4eb   : > { %2480 = vmatmul.mubr.msk.f32.vlgmr.msra.gmra.mxu0 %vm1730_vm0, %v1701_v1  ;;  %v1702_v63 = vmax.f32 %v1677_v60, 0.0  ;;  %v1716_v28 = vmax.f32 %v1691_v56, 0.0  ;;  %v1648_v9 = vmul.f32 %v3625_v27, %v1616_v44  ;;  %v1661_v10 = vmul.f32 %v3625_v27, %v1629_v37  ;;  %v1622_v57 = vld [vmem:[#allocation3 + $0x50] sm:$0xff]  ;;  %v1635_v59 = vld [vmem:[#allocation3 + $0xb8] sm:$0xff] }
 0x4ec   : > { %2519 = vmatmul.mubr.msk.f32.vlgmr.msra.gmra.mxu1 %vm1730_vm0, %v1714_v2  ;;  %2482 = vmatprep.mubr.msk.f32.mxu0 %vm2629_vm15, %v2628_v26  ;;  %v1692_v25 = vadd.f32 %v3627_v29, %v1660_v51  ;;  %v1649_v0 = vmul.f32 %v3625_v27, %v1617_v8  ;;  %v1662_v61 = vmul.f32 %v3625_v27, %v1630_v3  ;;  %v1704_v58 = vmax.f32 %v1679_v31, 0.0  ;;  %v1623_v5 = vld [vmem:[#allocation3 + $0x58] sm:$0xff]  ;;  %v1624_v31 = vld [vmem:[#allocation3 + $0x60] sm:$0xff] }
 0x4ed   : > { %2521 = vmatprep.mubr.msk.f32.mxu1 %vm2629_vm15, %v2628_v26  ;;  %v1680_v52 = vadd.f32 %v3627_v29, %v1648_v9  ;;  %v1693_v49 = vadd.f32 %v3627_v29, %v1661_v10  ;;  %v1650_v11 = vmul.f32 %v3625_v27, %v1618_v46  ;;  %v1663_v16 = vmul.f32 %v3625_v27, %v1631_v43 }
 0x4ee   : > { %v1717_v55 = vmax.f32 %v1692_v25, 0.0  ;;  %v1681_v40 = vadd.f32 %v3627_v29, %v1649_v0  ;;  %v1694_v15 = vadd.f32 %v3627_v29, %v1662_v61  ;;  %v1651_v50 = vmul.f32 %v3625_v27, %v1619_v20 }
 0x4ef   : > { %2483 = vmatmul.mubr.msk.f32.gmra.mxu0 %vm1730_vm0, %v1702_v63  ;;  %v1705_v39 = vmax.f32 %v1680_v52, 0.0  ;;  %v1718_v12 = vmax.f32 %v1693_v49, 0.0  ;;  %v1682_v45 = vadd.f32 %v3627_v29, %v1650_v11  ;;  %v1695_v14 = vadd.f32 %v3627_v29, %v1663_v16  ;;  %v1636_v63 = vld [vmem:[#allocation3 + $0xc0] sm:$0xff] }
 0x4f0   : > { %2522 = vmatmul.mubr.msk.f32.gmra.mxu1 %vm1730_vm0, %v1715_v38  ;;  %2485 = vmatprep.mubr.msk.f32.mxu0 %vm2629_vm15, %v2628_v26  ;;  %v1706_v24 = vmax.f32 %v1681_v40, 0.0  ;;  %v1719_v13 = vmax.f32 %v1694_v15, 0.0  ;;  %v1664_v17 = vmul.f32 %v3625_v27, %v1632_v21  ;;  %v1683_v7 = vadd.f32 %v3627_v29, %v1651_v50 }
 0x4f1   : > { %2524 = vmatprep.mubr.msk.f32.mxu1 %vm2629_vm15, %v2628_v26  ;;  %v1707_v22 = vmax.f32 %v1682_v45, 0.0  ;;  %v1720_v30 = vmax.f32 %v1695_v14, 0.0  ;;  %v1652_v33 = vmul.f32 %v3625_v27, %v1620_v18  ;;  %v1665_v35 = vmul.f32 %v3625_v27, %v1633_v19 }
 0x4f2   : > { %v1696_v32 = vadd.f32 %v3627_v29, %v1664_v17  ;;  %v1653_v42 = vmul.f32 %v3625_v27, %v1621_v36  ;;  %v1666_v47 = vmul.f32 %v3625_v27, %v1634_v41  ;;  %v1708_v48 = vmax.f32 %v1683_v7, 0.0 }
 0x4f3   : > { %2486 = vmatmul.mubr.msk.f32.gmra.mxu0 %vm1730_vm0, %v1703_v34  ;;  %v1684_v23 = vadd.f32 %v3627_v29, %v1652_v33  ;;  %v1697_v54 = vadd.f32 %v3627_v29, %v1665_v35  ;;  %v1654_v62 = vmul.f32 %v3625_v27, %v1622_v57  ;;  %v1667_v6 = vmul.f32 %v3625_v27, %v1635_v59 }
 0x4f4   : > { %2525 = vmatmul.mubr.msk.f32.gmra.mxu1 %vm1730_vm0, %v1716_v28  ;;  %2488 = vmatprep.mubr.msk.f32.mxu0 %vm2629_vm15, %v2628_v26  ;;  %v1721_v53 = vmax.f32 %v1696_v32, 0.0  ;;  %v1685_v60 = vadd.f32 %v3627_v29, %v1653_v42  ;;  %v1698_v2 = vadd.f32 %v3627_v29, %v1666_v47  ;;  %v1655_v56 = vmul.f32 %v3625_v27, %v1623_v5 }
 0x4f5   : > { %2527 = vmatprep.mubr.msk.f32.mxu1 %vm2629_vm15, %v2628_v26  ;;  %v1709_v4 = vmax.f32 %v1684_v23, 0.0  ;;  %v1722_v1 = vmax.f32 %v1697_v54, 0.0  ;;  %v1686_v38 = vadd.f32 %v3627_v29, %v1654_v62  ;;  %v1699_v37 = vadd.f32 %v3627_v29, %v1667_v6 }
 0x4f6   : > { %v1710_v51 = vmax.f32 %v1685_v60, 0.0  ;;  %v1723_v44 = vmax.f32 %v1698_v2, 0.0  ;;  %v1668_v34 = vmul.f32 %v3625_v27, %v1636_v63  ;;  %v1687_v9 = vadd.f32 %v3627_v29, %v1655_v56 }
 0x4f7   : > { %2489 = vmatmul.mubr.msk.f32.gmra.mxu0 %vm1730_vm0, %v1704_v58  ;;  %v1711_v28 = vmax.f32 %v1686_v38, 0.0  ;;  %v1724_v25 = vmax.f32 %v1699_v37, 0.0  ;;  %v1656_v8 = vmul.f32 %v3625_v27, %v1624_v31  ;;  %v3756_v58 = vstv %s1728_s19 }
 0x4f8   : > { %2528 = vmatmul.mubr.msk.f32.gmra.mxu1 %vm1730_vm0, %v1717_v55  ;;  %2491 = vmatprep.mubr.msk.f32.mxu0 %vm2629_vm15, %v2628_v26  ;;  %v1700_v10 = vadd.f32 %v3627_v29, %v1668_v34  ;;  %v1712_v3 = vmax.f32 %v1687_v9, 0.0 }
 0x4f9   : > { %2530 = vmatprep.mubr.msk.f32.mxu1 %vm2629_vm15, %v2628_v26  ;;  %v1688_v61 = vadd.f32 %v3627_v29, %v1656_v8 }
 0x4fa   : > { %v1725_v0 = vmax.f32 %v1700_v10, 0.0 }
 0x4fb   : > { %2492 = vmatmul.mubr.msk.f32.gmra.mxu0 %vm1730_vm0, %v1705_v39  ;;  %v1713_v27 = vmax.f32 %v1688_v61, 0.0 }
 0x4fc   : > { %2531 = vmatmul.mubr.msk.f32.gmra.mxu1 %vm1730_vm0, %v1718_v12  ;;  %2494 = vmatprep.mubr.msk.f32.mxu0 %vm2629_vm15, %v2628_v26 }
 0x4fd   : > { %2533 = vmatprep.mubr.msk.f32.mxu1 %vm2629_vm15, %v2628_v26 }
 0x4ff   : > { %2495 = vmatmul.mubr.msk.f32.gmra.mxu0 %vm1730_vm0, %v1706_v24 }
 0x500   : > { %2534 = vmatmul.mubr.msk.f32.gmra.mxu1 %vm1730_vm0, %v1719_v13  ;;  %2497 = vmatprep.mubr.msk.f32.mxu0 %vm2629_vm15, %v2628_v26 }
 0x501   : > { %2536 = vmatprep.mubr.msk.f32.mxu1 %vm2629_vm15, %v2628_v26 }
 0x503   : > { %2498 = vmatmul.mubr.msk.f32.gmra.mxu0 %vm1730_vm0, %v1707_v22 }
 0x504   : > { %2537 = vmatmul.mubr.msk.f32.gmra.mxu1 %vm1730_vm0, %v1720_v30  ;;  %2500 = vmatprep.mubr.msk.f32.mxu0 %vm2629_vm15, %v2628_v26 }
 0x505   : > { %2539 = vmatprep.mubr.msk.f32.mxu1 %vm2629_vm15, %v2628_v26 }
 0x507   : > { %2501 = vmatmul.mubr.msk.f32.gmra.mxu0 %vm1730_vm0, %v1708_v48 }
 0x508   : > { %2540 = vmatmul.mubr.msk.f32.gmra.mxu1 %vm1730_vm0, %v1721_v53  ;;  %2503 = vmatprep.mubr.msk.f32.mxu0 %vm2629_vm15, %v2628_v26 }
 0x509   : > { %2542 = vmatprep.mubr.msk.f32.mxu1 %vm2629_vm15, %v2628_v26 }
 0x50b   : > { %2504 = vmatmul.mubr.msk.f32.gmra.mxu0 %vm1730_vm0, %v1709_v4 }
 0x50c   : > { %2543 = vmatmul.mubr.msk.f32.gmra.mxu1 %vm1730_vm0, %v1722_v1  ;;  %2506 = vmatprep.mubr.msk.f32.mxu0 %vm2629_vm15, %v2628_v26 }
 0x50d   : > { %2545 = vmatprep.mubr.msk.f32.mxu1 %vm2629_vm15, %v2628_v26 }
 0x50f   : > { %2507 = vmatmul.mubr.msk.f32.gmra.mxu0 %vm1730_vm0, %v1710_v51 }
 0x510   : > { %2546 = vmatmul.mubr.msk.f32.gmra.mxu1 %vm1730_vm0, %v1723_v44  ;;  %2509 = vmatprep.mubr.msk.f32.mxu0 %vm2629_vm15, %v2628_v26 }
 0x511   : > { %2548 = vmatprep.mubr.msk.f32.mxu1 %vm2629_vm15, %v2628_v26 }
 0x513   : > { %2510 = vmatmul.mubr.msk.f32.gmra.mxu0 %vm1730_vm0, %v1711_v28 }
 0x514   : > { %2549 = vmatmul.mubr.msk.f32.gmra.mxu1 %vm1730_vm0, %v1724_v25  ;;  %2512 = vmatprep.mubr.msk.f32.mxu0 %vm2629_vm15, %v2628_v26 }
 0x515   : > { %2551 = vmatprep.mubr.msk.f32.mxu1 %vm2629_vm15, %v2628_v26 }
 0x517   : > { %2513 = vmatmul.mubr.msk.f32.gmra.mxu0 %vm1730_vm0, %v1712_v3 }
 0x518   : > { %2552 = vmatmul.mubr.msk.f32.gmra.mxu1 %vm1730_vm0, %v1725_v0  ;;  %2515 = vmatprep.mubr.msk.f32.mxu0 %vm2629_vm15, %v2628_v26 }
 0x51b   : > { %2516 = vmatmul.mubr.msk.f32.gmra.mxu0 %vm1730_vm0, %v1713_v27 }
 0x5ab   : > { %v1872_v29 = vpop.f32.mrf.mxu0 }
 0x5ac   : > { %v1937_v55 = vpop.f32.mrf.mxu1  ;;  %v1873_v52 = vadd.f32 %v1872_v29, %v3756_v58 }
 0x5ad   : > { %v1938_v49 = vadd.f32 %v1937_v55, %v3756_v58  ;;  %v2481_v46 = vpop.f32.mrf.mxu0 }
 0x5ae   : > { %v2520_v43 = vpop.f32.mrf.mxu1  ;;  %1997 = vst.msk [vmem:[%s3903_s11] sm:$0xff] %vm1996_vm1, %v1873_v52 }
 0x5af   : > { %2010 = vst.msk [vmem:[%s3903_s11 + $0x68] sm:$0xff] %vm1996_vm1, %v1938_v49  ;;  %v1877_v26 = vpop.f32.mrf.mxu0 }
 0x5b0   : > { %v1942_v40 = vpop.f32.mrf.mxu1  ;;  %v1878_v11 = vadd.f32 %v1877_v26, %v3756_v58 }
 0x5b1   : > { %v1943_v39 = vadd.f32 %v1942_v40, %v3756_v58  ;;  %v2484_v12 = vpop.f32.mrf.mxu0 }
 0x5b2   : > { %v2523_v15 = vpop.f32.mrf.mxu1  ;;  %1998 = vst.msk [vmem:[%s3903_s11 + $0x8] sm:$0xff] %vm1996_vm1, %v1878_v11 }
 0x5b3   : > { %2011 = vst.msk [vmem:[%s3903_s11 + $0x70] sm:$0xff] %vm1996_vm1, %v1943_v39  ;;  %v1882_v16 = vpop.f32.mrf.mxu0 }
 0x5b4   : > { %v1947_v20 = vpop.f32.mrf.mxu1  ;;  %v1883_v21 = vadd.f32 %v1882_v16, %v3756_v58 }
 0x5b5   : > { %v1948_v45 = vadd.f32 %v1947_v20, %v3756_v58  ;;  %v2487_v50 = vpop.f32.mrf.mxu0 }
 0x5b6   : > { %v2526_v24 = vpop.f32.mrf.mxu1  ;;  %1999 = vst.msk [vmem:[%s3903_s11 + $0x10] sm:$0xff] %vm1996_vm1, %v1883_v21 }
 0x5b7   : > { %2012 = vst.msk [vmem:[%s3903_s11 + $0x78] sm:$0xff] %vm1996_vm1, %v1948_v45  ;;  %v1887_v13 = vpop.f32.mrf.mxu0 }
 0x5b8   : > { %v1952_v14 = vpop.f32.mrf.mxu1  ;;  %v1888_v17 = vadd.f32 %v1887_v13, %v3756_v58 }
 0x5b9   : > { %v1953_v18 = vadd.f32 %v1952_v14, %v3756_v58  ;;  %v2490_v19 = vpop.f32.mrf.mxu0 }
 0x5ba   : > { %v2529_v22 = vpop.f32.mrf.mxu1  ;;  %2000 = vst.msk [vmem:[%s3903_s11 + $0x18] sm:$0xff] %vm1996_vm1, %v1888_v17 }
 0x5bb   : > { %2013 = vst.msk [vmem:[%s3903_s11 + $0x80] sm:$0xff] %vm1996_vm1, %v1953_v18  ;;  %v1892_v7 = vpop.f32.mrf.mxu0 }
 0x5bc   : > { %v1957_v30 = vpop.f32.mrf.mxu1  ;;  %v1893_v32 = vadd.f32 %v1892_v7, %v3756_v58 }
 0x5bd   : > { %v1958_v33 = vadd.f32 %v1957_v30, %v3756_v58  ;;  %v2493_v35 = vpop.f32.mrf.mxu0 }
 0x5be   : > { %v2532_v36 = vpop.f32.mrf.mxu1  ;;  %2001 = vst.msk [vmem:[%s3903_s11 + $0x20] sm:$0xff] %vm1996_vm1, %v1893_v32 }
 0x5bf   : > { %2014 = vst.msk [vmem:[%s3903_s11 + $0x88] sm:$0xff] %vm1996_vm1, %v1958_v33  ;;  %v1897_v41 = vpop.f32.mrf.mxu0 }
 0x5c0   : > { %v1962_v42 = vpop.f32.mrf.mxu1  ;;  %v1898_v47 = vadd.f32 %v1897_v41, %v3756_v58 }
 0x5c1   : > { %v1963_v48 = vadd.f32 %v1962_v42, %v3756_v58  ;;  %v2496_v53 = vpop.f32.mrf.mxu0 }
 0x5c2   : > { %v2535_v23 = vpop.f32.mrf.mxu1  ;;  %2002 = vst.msk [vmem:[%s3903_s11 + $0x28] sm:$0xff] %vm1996_vm1, %v1898_v47 }
 0x5c3   : > { %2015 = vst.msk [vmem:[%s3903_s11 + $0x90] sm:$0xff] %vm1996_vm1, %v1963_v48  ;;  %v1902_v54 = vpop.f32.mrf.mxu0 }
 0x5c4   : > { %v1967_v57 = vpop.f32.mrf.mxu1  ;;  %v1903_v59 = vadd.f32 %v1902_v54, %v3756_v58 }
 0x5c5   : > { %v1968_v60 = vadd.f32 %v1967_v57, %v3756_v58  ;;  %v2499_v62 = vpop.f32.mrf.mxu0 }
 0x5c6   : > { %v2538_v4 = vpop.f32.mrf.mxu1  ;;  %2003 = vst.msk [vmem:[%s3903_s11 + $0x30] sm:$0xff] %vm1996_vm1, %v1903_v59 }
 0x5c7   : > { %2016 = vst.msk [vmem:[%s3903_s11 + $0x98] sm:$0xff] %vm1996_vm1, %v1968_v60  ;;  %v1907_v1 = vpop.f32.mrf.mxu0 }
 0x5c8   : > { %v1972_v2 = vpop.f32.mrf.mxu1  ;;  %v1908_v6 = vadd.f32 %v1907_v1, %v3756_v58 }
 0x5c9   : > { %v1973_v5 = vadd.f32 %v1972_v2, %v3756_v58  ;;  %v2502_v63 = vpop.f32.mrf.mxu0 }
 0x5ca   : > { %v2541_v38 = vpop.f32.mrf.mxu1  ;;  %2004 = vst.msk [vmem:[%s3903_s11 + $0x38] sm:$0xff] %vm1996_vm1, %v1908_v6 }
 0x5cb   : > { %2017 = vst.msk [vmem:[%s3903_s11 + $0xa0] sm:$0xff] %vm1996_vm1, %v1973_v5  ;;  %v1912_v56 = vpop.f32.mrf.mxu0 }
 0x5cc   : > { %v1977_v51 = vpop.f32.mrf.mxu1  ;;  %v1913_v44 = vadd.f32 %v1912_v56, %v3756_v58 }
 0x5cd   : > { %v1978_v37 = vadd.f32 %v1977_v51, %v3756_v58  ;;  %v2505_v34 = vpop.f32.mrf.mxu0 }
 0x5ce   : > { %v2544_v31 = vpop.f32.mrf.mxu1  ;;  %2005 = vst.msk [vmem:[%s3903_s11 + $0x40] sm:$0xff] %vm1996_vm1, %v1913_v44 }
 0x5cf   : > { %2018 = vst.msk [vmem:[%s3903_s11 + $0xa8] sm:$0xff] %vm1996_vm1, %v1978_v37  ;;  %v1917_v28 = vpop.f32.mrf.mxu0 }
 0x5d0   : > { %v1982_v25 = vpop.f32.mrf.mxu1  ;;  %v1918_v9 = vadd.f32 %v1917_v28, %v3756_v58 }
 0x5d1   : > { %v1983_v10 = vadd.f32 %v1982_v25, %v3756_v58  ;;  %v2508_v8 = vpop.f32.mrf.mxu0 }
 0x5d2   : > { %v2547_v3 = vpop.f32.mrf.mxu1  ;;  %2006 = vst.msk [vmem:[%s3903_s11 + $0x48] sm:$0xff] %vm1996_vm1, %v1918_v9 }
 0x5d3   : > { %2019 = vst.msk [vmem:[%s3903_s11 + $0xb0] sm:$0xff] %vm1996_vm1, %v1983_v10  ;;  %v1922_v0 = vpop.f32.mrf.mxu0 }
 0x5d4   : > { %v1987_v61 = vpop.f32.mrf.mxu1  ;;  %v1923_v27 = vadd.f32 %v1922_v0, %v3756_v58 }
 0x5d5   : > { %v1988_v29 = vadd.f32 %v1987_v61, %v3756_v58  ;;  %v2511_v55 = vpop.f32.mrf.mxu0 }
 0x5d6   : > { %v2550_v52 = vpop.f32.mrf.mxu1  ;;  %2007 = vst.msk [vmem:[%s3903_s11 + $0x50] sm:$0xff] %vm1996_vm1, %v1923_v27 }
 0x5d7   : > { %2020 = vst.msk [vmem:[%s3903_s11 + $0xb8] sm:$0xff] %vm1996_vm1, %v1988_v29  ;;  %v1927_v49 = vpop.f32.mrf.mxu0 }
 0x5d8   : > { %v1992_v46 = vpop.f32.mrf.mxu1  ;;  %v1928_v43 = vadd.f32 %v1927_v49, %v3756_v58 }
 0x5d9   : > { %v1993_v26 = vadd.f32 %v1992_v46, %v3756_v58  ;;  %v2514_v40 = vpop.f32.mrf.mxu0 }
 0x5da   : > { %v2553_v11 = vpop.f32.mrf.mxu1  ;;  %2008 = vst.msk [vmem:[%s3903_s11 + $0x58] sm:$0xff] %vm1996_vm1, %v1928_v43 }
 0x5db   : > { %2021 = vst.msk [vmem:[%s3903_s11 + $0xc0] sm:$0xff] %vm1996_vm1, %v1993_v26  ;;  %v1932_v39 = vpop.f32.mrf.mxu0 }
 0x5dc   : > { %v1933_v12 = vadd.f32 %v1932_v39, %v3756_v58 }
 0x5dd   : > { %v2517_v15 = vpop.f32.mrf.mxu0 }
 0x5de   : > { %2009 = vst.msk [vmem:[%s3903_s11 + $0x60] sm:$0xff] %vm1996_vm1, %v1933_v12 }
 0x5df PF: > { %s22_s21 = sadd.s32 1, %s2618_s21   ;;  %s3904_s19 = smov %s2614_s20 }
 0x5e0   : > { %p19_p10 = scmp.ge.s32.totalorder %s22_s21, 5   ;;  %s3905_s20 = smov %s3907_s10 }
 0x5e2   :  { %21 = sbr.rel (!%p19_p10) target bundleno = 2 (0x2), region = 122 }

</bundles_post_ra>
